<compile_context>
chip_gen: v7x
topology: tpu7x:2x2x1
jax: 0.10.0
libtpu: 0.0.40
codegen_flags: <defaults>
</compile_context>

<pallas_src>
import functools
import math

import jax
import jax.numpy as jnp
from jax import lax
from jax.experimental import pallas as pl
from jax.experimental.pallas import tpu as pltpu

# ----------------------------- model config ------------------------------
VOCAB = 256
HIDDEN = 32
N_HEADS = 4
HEAD_DIM = HIDDEN // N_HEADS
FFN = 64
N_LAYERS = 2
MAX_SEQ = 16
DTYPE = jnp.float32          # FmsModelBase uses float32 for non-sendnn backends
MXU_DTYPE = jnp.bfloat16     # matmul-operand dtype (f32 accumulation on MXU)

SMALL_LANES = 128                              # packed small-param slab width
SMALL_ROWS_PER_LAYER = 3
SMALL_ROWS = N_LAYERS * SMALL_ROWS_PER_LAYER + 1
KV_LANES = 2 * HIDDEN * N_LAYERS               # 128: [K_l0 | V_l0 | K_l1 | V_l1]


# ----------------------------- fused kernel ------------------------------
def _fwd_kernel(
    x_ref,       # (M, H)        f32  activations, batch folded into rows
    m_ref,       # (M, M)        f32  block-diagonal additive attention mask
    wqkv_ref,    # (L, H, 3H)    bf16 fused QKV weights
    wo_ref,      # (L, NH, Dh, H) bf16 output projection, split by head rows
    w1_ref,      # (L, H, FFN)   bf16
    w2_ref,      # (L, FFN, H)   bf16
    lm_ref,      # (H, VOCAB)    bf16
    small_ref,   # (SMALL_ROWS, 128) f32 packed biases / LN params
    logits_ref,  # (M_out, VOCAB) f32
    kv_ref,      # (M, KV_LANES)  f32 lane-dense KV-cache slab
    *,
    only_last_token: bool,
    batch: int,
    seq: int,
):
    x = x_ref[...]                              # (M, H) f32 residual stream
    mask = m_ref[...]                           # (M, M) additive mask
    q_scale = 1.0 / math.sqrt(HEAD_DIM)

    def layer_norm(v, g, b):
        # one-pass statistics: E[x], E[x^2]  (half the XLU reduce pushes)
        m1 = jnp.mean(v, axis=-1, keepdims=True)
        m2 = jnp.mean(v * v, axis=-1, keepdims=True)
        var = m2 - m1 * m1
        return (v - m1) * lax.rsqrt(var + 1e-5) * g + b

    for l in range(N_LAYERS):
        # -- packed small params for this layer (one slab, static row slices) --
        base = SMALL_ROWS_PER_LAYER * l
        r0 = small_ref[base:base + 1, :]        # [bq|bk|bv|bo]
        r1 = small_ref[base + 1:base + 2, :]    # [b1|b2|pad]
        r2 = small_ref[base + 2:base + 3, :]    # [ln1_g|ln1_b|ln2_g|ln2_b]
        bqkv = r0[:, :3 * HIDDEN]
        bo = r0[:, 3 * HIDDEN:4 * HIDDEN]
        b1 = r1[:, :FFN]
        b2 = r1[:, FFN:FFN + HIDDEN]
        ln1_g = r2[:, 0 * HIDDEN:1 * HIDDEN]
        ln1_b = r2[:, 1 * HIDDEN:2 * HIDDEN]
        ln2_g = r2[:, 2 * HIDDEN:3 * HIDDEN]
        ln2_b = r2[:, 3 * HIDDEN:4 * HIDDEN]

        # ---- attention block ----
        xn = layer_norm(x, ln1_g, ln1_b)
        qkv = jnp.dot(xn.astype(MXU_DTYPE), wqkv_ref[l],
                      preferred_element_type=jnp.float32) + bqkv    # (M, 3H) f32

        # lane-dense KV-cache writeback: raw (unscaled) K and V on contiguous
        # lanes.  Contract: 1/sqrt(head_dim) is folded into Q only; any decode
        # consumer must scale Q, never K.
        kv_ref[:, 2 * HIDDEN * l:2 * HIDDEN * (l + 1)] = qkv[:, HIDDEN:3 * HIDDEN]

        q = (qkv[:, :HIDDEN] * q_scale).astype(MXU_DTYPE)
        k = qkv[:, HIDDEN:2 * HIDDEN].astype(MXU_DTYPE)
        v = qkv[:, 2 * HIDDEN:].astype(MXU_DTYPE)

        # per-head QK^T on the MXU, stacked so the softmax pipeline (mask add,
        # max, exp, sum, reciprocal) is issued once for all heads.
        scores = jnp.concatenate(
            [lax.dot_general(
                q[:, h * HEAD_DIM:(h + 1) * HEAD_DIM],
                k[:, h * HEAD_DIM:(h + 1) * HEAD_DIM],
                (((1,), (1,)), ((), ())),
                preferred_element_type=jnp.float32)[None]
             for h in range(N_HEADS)],
            axis=0)                                                # (NH, M, M)
        s = scores + mask[None]                                    # mask once
        s = s - jnp.max(s, axis=-1, keepdims=True)
        p = jnp.exp(s)
        # approx reciprocal runs on the EUP slot; ~1e-3 rel. error vs divide.
        p = p * pl.reciprocal(jnp.sum(p, axis=-1, keepdims=True), approx=True)
        p = p.astype(MXU_DTYPE)

        # head outputs accumulated straight through the matching rows of W_o:
        # no per-head concat / XLU lane shuffles.
        wo_l = wo_ref[l]                                           # (NH, Dh, H)
        attn = None
        for h in range(N_HEADS):
            sl = slice(h * HEAD_DIM, (h + 1) * HEAD_DIM)
            ctx = jnp.dot(p[h], v[:, sl],
                          preferred_element_type=jnp.float32)      # (M, Dh)
            contrib = jnp.dot(ctx.astype(MXU_DTYPE), wo_l[h],
                              preferred_element_type=jnp.float32)  # (M, H)
            attn = contrib if attn is None else attn + contrib
        x = x + attn + bo

        # ---- MLP block ----
        xn2 = layer_norm(x, ln2_g, ln2_b)
        h1 = jnp.dot(xn2.astype(MXU_DTYPE), w1_ref[l],
                     preferred_element_type=jnp.float32) + b1
        # tanh-approx GELU (explicit); switch approximate=False if the
        # reference checkpoint uses exact erf GELU.
        h1 = jax.nn.gelu(h1, approximate=True)
        x = x + jnp.dot(h1.astype(MXU_DTYPE), w2_ref[l],
                        preferred_element_type=jnp.float32) + b2

    # ---- final norm + lm head ----
    if only_last_token:
        # gather the last row of each batch element BEFORE LN / lm_head
        x = jnp.concatenate(
            [x[b * seq + seq - 1:b * seq + seq, :] for b in range(batch)],
            axis=0)                                                # (B, H)

    rf = small_ref[SMALL_ROWS - 1:SMALL_ROWS, :]
    lnf_g = rf[:, :HIDDEN]
    lnf_b = rf[:, HIDDEN:2 * HIDDEN]
    xf = layer_norm(x, lnf_g, lnf_b)

    logits_ref[...] = jnp.dot(xf.astype(MXU_DTYPE), lm_ref[...],
                              preferred_element_type=jnp.float32)


# ----------------------------- spec helpers --------------------------------
def _full_spec(shape):
    n = len(shape)
    return pl.BlockSpec(tuple(shape), lambda i, _n=n: (0,) * _n)


# ----------------------------- jitted forward ------------------------------
@functools.partial(jax.jit, static_argnames=("only_last_token",))
def _forward(packed, input_ids, position_ids, mask, *, only_last_token):
    B, S = input_ids.shape
    M = B * S

    # embedding gather (glue, plain JAX inside jit), batch folded into rows
    x = (packed["wte"][input_ids] + packed["wpe"][position_ids]).astype(DTYPE)
    x = x.reshape(M, HIDDEN)

    # block-diagonal additive mask over the folded batch: cross-batch = -1e9
    m = mask[:, 0].astype(DTYPE)                                    # (B, S, S)
    bi = jnp.arange(B)
    same_batch = bi[:, None, None, None] == bi[None, None, :, None]  # (B,1,B,1)
    m4 = jnp.broadcast_to(m[:, :, None, :], (B, S, B, S))
    mask_full = jnp.where(same_batch, m4, jnp.asarray(-1e9, DTYPE)).reshape(M, M)

    M_out = B if only_last_token else M

    in_specs = [
        _full_spec((M, HIDDEN)),                             # x
        _full_spec((M, M)),                                  # mask
        _full_spec((N_LAYERS, HIDDEN, 3 * HIDDEN)),          # wqkv (bf16)
        _full_spec((N_LAYERS, N_HEADS, HEAD_DIM, HIDDEN)),   # wo   (bf16)
        _full_spec((N_LAYERS, HIDDEN, FFN)),                 # w1   (bf16)
        _full_spec((N_LAYERS, FFN, HIDDEN)),                 # w2   (bf16)
        _full_spec((HIDDEN, VOCAB)),                         # lm_head (bf16)
        _full_spec((SMALL_ROWS, SMALL_LANES)),               # packed small params
    ]
    out_specs = (
        _full_spec((M_out, VOCAB)),                          # logits
        _full_spec((M, KV_LANES)),                           # lane-dense KV slab
    )
    out_shape = (
        jax.ShapeDtypeStruct((M_out, VOCAB), DTYPE),
        jax.ShapeDtypeStruct((M, KV_LANES), DTYPE),
    )

    logits, kv_slab = pl.pallas_call(
        functools.partial(_fwd_kernel, only_last_token=only_last_token,
                          batch=B, seq=S),
        out_shape=out_shape,
        grid=(1,),
        in_specs=in_specs,
        out_specs=out_specs,
        compiler_params=pltpu.CompilerParams(
            dimension_semantics=("arbitrary",),
            # explicit scoped-VMEM budget: toy sizes fit trivially; re-derive
            # (and stream weights over a layer/vocab grid) at real FMS sizes.
            vmem_limit_bytes=32 * 1024 * 1024,
        ),
    )(x, mask_full, packed["wqkv"], packed["wo"], packed["w1"], packed["w2"],
      packed["lm_head"], packed["small"])

    # unpack the lane-dense KV slab into the layout the module exposes:
    # per layer, (k, v) each of shape (B, n_heads, S, head_dim).  K is raw.
    kv = []
    for l in range(N_LAYERS):
        base = 2 * HIDDEN * l
        k_l = kv_slab[:, base:base + HIDDEN]
        v_l = kv_slab[:, base + HIDDEN:base + 2 * HIDDEN]
        k_l = k_l.reshape(B, S, N_HEADS, HEAD_DIM).transpose(0, 2, 1, 3)
        v_l = v_l.reshape(B, S, N_HEADS, HEAD_DIM).transpose(0, 2, 1, 3)
        kv.append((k_l, v_l))

    if not only_last_token:
        logits = logits.reshape(B, S, VOCAB)
    return logits, tuple(kv)


# ----------------------------- parameter init -----------------------------
def init_params(key):
    def nrm(k, shape, scale=0.02):
        return (scale * jax.random.normal(k, shape, dtype=jnp.float32)).astype(DTYPE)

    keys = iter(jax.random.split(key, 8 + N_LAYERS * 16))
    params = {
        "wte": nrm(next(keys), (VOCAB, HIDDEN)),
        "wpe": nrm(next(keys), (MAX_SEQ, HIDDEN)),
        "lnf_g": jnp.ones((HIDDEN,), DTYPE),
        "lnf_b": jnp.zeros((HIDDEN,), DTYPE),
        "lm_head": nrm(next(keys), (HIDDEN, VOCAB)),
        "layers": [],
    }
    for _ in range(N_LAYERS):
        layer = {
            "ln1_g": jnp.ones((HIDDEN,), DTYPE),
            "ln1_b": jnp.zeros((HIDDEN,), DTYPE),
            "wq": nrm(next(keys), (HIDDEN, HIDDEN)),
            "bq": jnp.zeros((HIDDEN,), DTYPE),
            "wk": nrm(next(keys), (HIDDEN, HIDDEN)),
            "bk": jnp.zeros((HIDDEN,), DTYPE),
            "wv": nrm(next(keys), (HIDDEN, HIDDEN)),
            "bv": jnp.zeros((HIDDEN,), DTYPE),
            "wo": nrm(next(keys), (HIDDEN, HIDDEN)),
            "bo": jnp.zeros((HIDDEN,), DTYPE),
            "ln2_g": jnp.ones((HIDDEN,), DTYPE),
            "ln2_b": jnp.zeros((HIDDEN,), DTYPE),
            "w1": nrm(next(keys), (HIDDEN, FFN)),
            "b1": jnp.zeros((FFN,), DTYPE),
            "w2": nrm(next(keys), (FFN, HIDDEN)),
            "b2": jnp.zeros((HIDDEN,), DTYPE),
        }
        params["layers"].append(layer)
    return params


def pack_params(p):
    """Pack weights into stacked, kernel-friendly arrays (once).

    Matmul weights are stored in bf16 (MXU-native); biases and LayerNorm
    parameters are packed into one f32 (3L+1, 128) slab.
    """
    L = p["layers"]

    def stack_bf16(name):
        return jnp.stack([layer[name] for layer in L]).astype(MXU_DTYPE)

    # fused QKV: lane-dense (H, 3H) weight per layer
    wqkv = jnp.stack(
        [jnp.concatenate([l["wq"], l["wk"], l["wv"]], axis=1) for l in L]
    ).astype(MXU_DTYPE)
    # output projection split by head rows: (L, NH, Dh, H)
    wo = jnp.stack([l["wo"] for l in L]).reshape(
        N_LAYERS, N_HEADS, HEAD_DIM, HIDDEN).astype(MXU_DTYPE)

    # packed small-parameter slab: 3 rows per layer + 1 final-LN row, 128 lanes
    rows = []
    for l in L:
        rows.append(jnp.concatenate([l["bq"], l["bk"], l["bv"], l["bo"]]))
        rows.append(jnp.concatenate(
            [l["b1"], l["b2"],
             jnp.zeros((SMALL_LANES - FFN - HIDDEN,), DTYPE)]))
        rows.append(jnp.concatenate(
            [l["ln1_g"], l["ln1_b"], l["ln2_g"], l["ln2_b"]]))
    rows.append(jnp.concatenate(
        [p["lnf_g"], p["lnf_b"],
         jnp.zeros((SMALL_LANES - 2 * HIDDEN,), DTYPE)]))
    small = jnp.stack(rows).astype(DTYPE)            # (SMALL_ROWS, 128)

    return {
        "wte": p["wte"],
        "wpe": p["wpe"],
        "wqkv": wqkv,
        "wo": wo,
        "w1": stack_bf16("w1"),
        "w2": stack_bf16("w2"),
        "lm_head": p["lm_head"].astype(MXU_DTYPE),
        "small": small,
    }


# ----------------------------- the module ---------------------------------
class StaticBatchingFmsModel:
    """JAX/Pallas equivalent of vllm_spyre StaticBatchingFmsModel."""

    def __init__(self, params):
        self.params = params
        self.packed = pack_params(params)
        self.past_key_value_states = None  # list[(k, v)] per layer

    def forward(
        self,
        input_ids,      # (B, S) int32
        position_ids,   # (B, S) int32
        mask,           # (B, 1, S, S) additive float mask
        use_cache,
        only_last_token,
        tkv,            # unused here (static-batching bookkeeping)
        active_pages,   # unused here (static-batching bookkeeping)
        **extra_kwargs,
    ):
        # TODO(synk): tkv / active_pages drive Spyre paged-cache bookkeeping and
        # past_key_value_states consumption inside the compiled sendnn graph;
        # this kernel implements the prefill-style dense forward (cache is
        # produced, not consumed).
        logits, kv = _forward(
            self.packed, input_ids, position_ids, mask,
            only_last_token=bool(only_last_token),
        )
        if use_cache:
            self.past_key_value_states = list(kv)
        return logits


# ----------------------------- demo / smoke test ---------------------------
if __name__ == "__main__":
    B, S = 2, 8
    key = jax.random.PRNGKey(0)
    k_param, k_ids = jax.random.split(key)

    params = init_params(k_param)
    model = StaticBatchingFmsModel(params)

    input_ids = jax.random.randint(k_ids, (B, S), 0, VOCAB, dtype=jnp.int32)
    position_ids = jnp.broadcast_to(jnp.arange(S, dtype=jnp.int32), (B, S))
    # additive causal mask (B, 1, S, S): 0 where visible, -1e9 where masked
    causal = jnp.tril(jnp.ones((S, S), dtype=bool))
    mask = jnp.where(causal, 0.0, -1e9).astype(DTYPE)[None, None]
    mask = jnp.broadcast_to(mask, (B, 1, S, S))

    # full-sequence (prefill) path
    logits = model.forward(
        input_ids, position_ids, mask,
        use_cache=True, only_last_token=False,
        tkv=S, active_pages=list(range(B)),
    )
    jax.block_until_ready(logits)

    assert logits.shape == (B, S, VOCAB)
    assert model.past_key_value_states is not None
    assert model.past_key_value_states[0][0].shape == (B, N_HEADS, S, HEAD_DIM)
    assert bool(jnp.all(jnp.isfinite(logits)))

    # last-token (decode-style) path: lm_head runs on one row per batch element
    logits_last = model.forward(
        input_ids, position_ids, mask,
        use_cache=True, only_last_token=True,
        tkv=S, active_pages=list(range(B)),
    )
    jax.block_until_ready(logits_last)

    assert logits_last.shape == (B, VOCAB)
    assert bool(jnp.all(jnp.isfinite(logits_last)))
    assert bool(jnp.allclose(logits_last, logits[:, -1, :], atol=1e-3, rtol=1e-3))

    print("KERNEL_OK")
</pallas_src>

<mosaic_0001>
module attributes {stable_mosaic.version = 11 : i64} {
  func.func @_fwd_kernel(%arg0: i32, %arg1: memref<16x32xf32, #tpu.memory_space<vmem>>, %arg2: memref<16x16xf32, #tpu.memory_space<vmem>>, %arg3: memref<2x32x96xbf16, #tpu.memory_space<vmem>>, %arg4: memref<2x4x8x32xbf16, #tpu.memory_space<vmem>>, %arg5: memref<2x32x64xbf16, #tpu.memory_space<vmem>>, %arg6: memref<2x64x32xbf16, #tpu.memory_space<vmem>>, %arg7: memref<32x256xbf16, #tpu.memory_space<vmem>>, %arg8: memref<7x128xf32, #tpu.memory_space<vmem>>, %arg9: memref<16x256xf32, #tpu.memory_space<vmem>>, %arg10: memref<16x128xf32, #tpu.memory_space<vmem>>) attributes {dimension_semantics = [#tpu.dimension_semantics<arbitrary>], iteration_bounds = array<i64: 1>, scalar_prefetch = 0 : i64, scratch_operands = 0 : i64, tpu.core_type = #tpu.core_type<tc>, window_params = [{pipeline_mode = #tpu.pipeline_mode<synchronous>, transform_indices = @transform_0, window_bounds = array<i64: 16, 32>}, {pipeline_mode = #tpu.pipeline_mode<synchronous>, transform_indices = @transform_1, window_bounds = array<i64: 16, 16>}, {pipeline_mode = #tpu.pipeline_mode<synchronous>, transform_indices = @transform_2, window_bounds = array<i64: 2, 32, 96>}, {pipeline_mode = #tpu.pipeline_mode<synchronous>, transform_indices = @transform_3, window_bounds = array<i64: 2, 4, 8, 32>}, {pipeline_mode = #tpu.pipeline_mode<synchronous>, transform_indices = @transform_4, window_bounds = array<i64: 2, 32, 64>}, {pipeline_mode = #tpu.pipeline_mode<synchronous>, transform_indices = @transform_5, window_bounds = array<i64: 2, 64, 32>}, {pipeline_mode = #tpu.pipeline_mode<synchronous>, transform_indices = @transform_6, window_bounds = array<i64: 32, 256>}, {pipeline_mode = #tpu.pipeline_mode<synchronous>, transform_indices = @transform_7, window_bounds = array<i64: 7, 128>}, {pipeline_mode = #tpu.pipeline_mode<synchronous>, transform_indices = @transform_8, window_bounds = array<i64: 16, 256>}, {pipeline_mode = #tpu.pipeline_mode<synchronous>, transform_indices = @transform_9, window_bounds = array<i64: 16, 128>}]} {
    %c0 = arith.constant 0 : index
    %c0_0 = arith.constant 0 : index
    %0 = vector.load %arg1[%c0, %c0_0] : memref<16x32xf32, #tpu.memory_space<vmem>>, vector<16x32xf32>
    %c0_1 = arith.constant 0 : index
    %c0_2 = arith.constant 0 : index
    %1 = vector.load %arg2[%c0_1, %c0_2] : memref<16x16xf32, #tpu.memory_space<vmem>>, vector<16x16xf32>
    %c0_3 = arith.constant 0 : index
    %c0_4 = arith.constant 0 : index
    %2 = vector.load %arg8[%c0_3, %c0_4] : memref<7x128xf32, #tpu.memory_space<vmem>>, vector<1x128xf32>
    %c1 = arith.constant 1 : index
    %c0_5 = arith.constant 0 : index
    %3 = vector.load %arg8[%c1, %c0_5] : memref<7x128xf32, #tpu.memory_space<vmem>>, vector<1x128xf32>
    %c2 = arith.constant 2 : index
    %c0_6 = arith.constant 0 : index
    %4 = vector.load %arg8[%c2, %c0_6] : memref<7x128xf32, #tpu.memory_space<vmem>>, vector<1x128xf32>
    %5 = vector.extract_strided_slice %2 {offsets = [0, 0], sizes = [1, 96], strides = [1, 1]} : vector<1x128xf32> to vector<1x96xf32>
    %6 = vector.extract_strided_slice %2 {offsets = [0, 96], sizes = [1, 32], strides = [1, 1]} : vector<1x128xf32> to vector<1x32xf32>
    %7 = vector.extract_strided_slice %3 {offsets = [0, 0], sizes = [1, 64], strides = [1, 1]} : vector<1x128xf32> to vector<1x64xf32>
    %8 = vector.extract_strided_slice %3 {offsets = [0, 64], sizes = [1, 32], strides = [1, 1]} : vector<1x128xf32> to vector<1x32xf32>
    %9 = vector.extract_strided_slice %4 {offsets = [0, 0], sizes = [1, 32], strides = [1, 1]} : vector<1x128xf32> to vector<1x32xf32>
    %10 = vector.extract_strided_slice %4 {offsets = [0, 32], sizes = [1, 32], strides = [1, 1]} : vector<1x128xf32> to vector<1x32xf32>
    %11 = vector.extract_strided_slice %4 {offsets = [0, 64], sizes = [1, 32], strides = [1, 1]} : vector<1x128xf32> to vector<1x32xf32>
    %12 = vector.extract_strided_slice %4 {offsets = [0, 96], sizes = [1, 32], strides = [1, 1]} : vector<1x128xf32> to vector<1x32xf32>
    %cst = arith.constant dense<0.000000e+00> : vector<16xf32>
    %13 = vector.multi_reduction <add>, %0, %cst [1] : vector<16x32xf32> to vector<16xf32>
    %14 = vector.shape_cast %13 : vector<16xf32> to vector<16x1xf32>
    %cst_7 = arith.constant 3.200000e+01 : f32
    %15 = vector.broadcast %cst_7 : f32 to vector<16x1xf32>
    %16 = arith.divf %14, %15 : vector<16x1xf32>
    %17 = arith.mulf %0, %0 : vector<16x32xf32>
    %cst_8 = arith.constant dense<0.000000e+00> : vector<16xf32>
    %18 = vector.multi_reduction <add>, %17, %cst_8 [1] : vector<16x32xf32> to vector<16xf32>
    %19 = vector.shape_cast %18 : vector<16xf32> to vector<16x1xf32>
    %cst_9 = arith.constant 3.200000e+01 : f32
    %20 = vector.broadcast %cst_9 : f32 to vector<16x1xf32>
    %21 = arith.divf %19, %20 : vector<16x1xf32>
    %22 = arith.mulf %16, %16 : vector<16x1xf32>
    %23 = arith.subf %21, %22 : vector<16x1xf32>
    %24 = vector.broadcast %16 : vector<16x1xf32> to vector<16x32xf32>
    %25 = arith.subf %0, %24 : vector<16x32xf32>
    %cst_10 = arith.constant 9.99999974E-6 : f32
    %26 = vector.broadcast %cst_10 : f32 to vector<16x1xf32>
    %27 = arith.addf %23, %26 : vector<16x1xf32>
    %28 = math.rsqrt %27 : vector<16x1xf32>
    %29 = vector.broadcast %28 : vector<16x1xf32> to vector<16x32xf32>
    %30 = arith.mulf %25, %29 : vector<16x32xf32>
    %31 = vector.broadcast %9 : vector<1x32xf32> to vector<16x32xf32>
    %32 = arith.mulf %30, %31 : vector<16x32xf32>
    %33 = vector.broadcast %10 : vector<1x32xf32> to vector<16x32xf32>
    %34 = arith.addf %32, %33 : vector<16x32xf32>
    %35 = arith.truncf %34 : vector<16x32xf32> to vector<16x32xbf16>
    %c0_11 = arith.constant 0 : index
    %c0_12 = arith.constant 0 : index
    %c0_13 = arith.constant 0 : index
    %36 = vector.load %arg3[%c0_11, %c0_12, %c0_13] : memref<2x32x96xbf16, #tpu.memory_space<vmem>>, vector<1x32x96xbf16>
    %37 = vector.shape_cast %36 : vector<1x32x96xbf16> to vector<32x96xbf16>
    %cst_14 = arith.constant dense<0.000000e+00> : vector<16x96xf32>
    %38 = tpu.matmul %35, %37, %cst_14 {dimension_numbers = #tpu.dot_dimension_numbers<[1], [0], [0], [1], [0, 0, 1, 1], [], []>} : vector<16x32xbf16>, vector<32x96xbf16>, vector<16x96xf32> -> vector<16x96xf32>
    %39 = vector.broadcast %5 : vector<1x96xf32> to vector<16x96xf32>
    %40 = arith.addf %38, %39 : vector<16x96xf32>
    %41 = vector.extract_strided_slice %40 {offsets = [0, 32], sizes = [16, 64], strides = [1, 1]} : vector<16x96xf32> to vector<16x64xf32>
    %c0_15 = arith.constant 0 : index
    %c0_16 = arith.constant 0 : index
    %42 = vector.load %arg10[%c0_15, %c0_16] : memref<16x128xf32, #tpu.memory_space<vmem>>, vector<16x64xf32>
    tpu.vector_store %arg10[%c0_15, %c0_16], %41 {strides = array<i32>} : memref<16x128xf32, #tpu.memory_space<vmem>>, vector<16x64xf32>,
    %43 = vector.extract_strided_slice %40 {offsets = [0, 0], sizes = [16, 32], strides = [1, 1]} : vector<16x96xf32> to vector<16x32xf32>
    %cst_17 = arith.constant 0.353553385 : f32
    %44 = vector.broadcast %cst_17 : f32 to vector<16x32xf32>
    %45 = arith.mulf %43, %44 : vector<16x32xf32>
    %46 = arith.truncf %45 : vector<16x32xf32> to vector<16x32xbf16>
    %47 = vector.extract_strided_slice %40 {offsets = [0, 32], sizes = [16, 32], strides = [1, 1]} : vector<16x96xf32> to vector<16x32xf32>
    %48 = arith.truncf %47 : vector<16x32xf32> to vector<16x32xbf16>
    %49 = vector.extract_strided_slice %40 {offsets = [0, 64], sizes = [16, 32], strides = [1, 1]} : vector<16x96xf32> to vector<16x32xf32>
    %50 = arith.truncf %49 : vector<16x32xf32> to vector<16x32xbf16>
    %51 = vector.extract_strided_slice %46 {offsets = [0, 0], sizes = [16, 8], strides = [1, 1]} : vector<16x32xbf16> to vector<16x8xbf16>
    %52 = vector.extract_strided_slice %48 {offsets = [0, 0], sizes = [16, 8], strides = [1, 1]} : vector<16x32xbf16> to vector<16x8xbf16>
    %cst_18 = arith.constant dense<0.000000e+00> : vector<16x16xf32>
    %53 = tpu.matmul %51, %52, %cst_18 {dimension_numbers = #tpu.dot_dimension_numbers<[1], [1], [0], [0], [0, 0, 1, 0], [], []>} : vector<16x8xbf16>, vector<16x8xbf16>, vector<16x16xf32> -> vector<16x16xf32>
    %54 = vector.shape_cast %53 : vector<16x16xf32> to vector<1x16x16xf32>
    %55 = vector.extract_strided_slice %46 {offsets = [0, 8], sizes = [16, 8], strides = [1, 1]} : vector<16x32xbf16> to vector<16x8xbf16>
    %56 = vector.extract_strided_slice %48 {offsets = [0, 8], sizes = [16, 8], strides = [1, 1]} : vector<16x32xbf16> to vector<16x8xbf16>
    %cst_19 = arith.constant dense<0.000000e+00> : vector<16x16xf32>
    %57 = tpu.matmul %55, %56, %cst_19 {dimension_numbers = #tpu.dot_dimension_numbers<[1], [1], [0], [0], [0, 0, 1, 0], [], []>} : vector<16x8xbf16>, vector<16x8xbf16>, vector<16x16xf32> -> vector<16x16xf32>
    %58 = vector.shape_cast %57 : vector<16x16xf32> to vector<1x16x16xf32>
    %59 = vector.extract_strided_slice %46 {offsets = [0, 16], sizes = [16, 8], strides = [1, 1]} : vector<16x32xbf16> to vector<16x8xbf16>
    %60 = vector.extract_strided_slice %48 {offsets = [0, 16], sizes = [16, 8], strides = [1, 1]} : vector<16x32xbf16> to vector<16x8xbf16>
    %cst_20 = arith.constant dense<0.000000e+00> : vector<16x16xf32>
    %61 = tpu.matmul %59, %60, %cst_20 {dimension_numbers = #tpu.dot_dimension_numbers<[1], [1], [0], [0], [0, 0, 1, 0], [], []>} : vector<16x8xbf16>, vector<16x8xbf16>, vector<16x16xf32> -> vector<16x16xf32>
    %62 = vector.shape_cast %61 : vector<16x16xf32> to vector<1x16x16xf32>
    %63 = vector.extract_strided_slice %46 {offsets = [0, 24], sizes = [16, 8], strides = [1, 1]} : vector<16x32xbf16> to vector<16x8xbf16>
    %64 = vector.extract_strided_slice %48 {offsets = [0, 24], sizes = [16, 8], strides = [1, 1]} : vector<16x32xbf16> to vector<16x8xbf16>
    %cst_21 = arith.constant dense<0.000000e+00> : vector<16x16xf32>
    %65 = tpu.matmul %63, %64, %cst_21 {dimension_numbers = #tpu.dot_dimension_numbers<[1], [1], [0], [0], [0, 0, 1, 0], [], []>} : vector<16x8xbf16>, vector<16x8xbf16>, vector<16x16xf32> -> vector<16x16xf32>
    %66 = vector.shape_cast %65 : vector<16x16xf32> to vector<1x16x16xf32>
    %67 = tpu.concatenate %54, %58, %62, %66 in 0 : vector<1x16x16xf32>, vector<1x16x16xf32>, vector<1x16x16xf32>, vector<1x16x16xf32> -> vector<4x16x16xf32>
    %68 = vector.shape_cast %1 : vector<16x16xf32> to vector<1x16x16xf32>
    %69 = vector.broadcast %68 : vector<1x16x16xf32> to vector<4x16x16xf32>
    %70 = arith.addf %67, %69 : vector<4x16x16xf32>
    %cst_22 = arith.constant dense<0xFF800000> : vector<4x16xf32>
    %71 = vector.multi_reduction <maximumf>, %70, %cst_22 [2] : vector<4x16x16xf32> to vector<4x16xf32>
    %72 = vector.shape_cast %71 : vector<4x16xf32> to vector<4x16x1xf32>
    %73 = vector.broadcast %72 : vector<4x16x1xf32> to vector<4x16x16xf32>
    %74 = arith.subf %70, %73 : vector<4x16x16xf32>
    %75 = math.exp %74 : vector<4x16x16xf32>
    %cst_23 = arith.constant dense<0.000000e+00> : vector<4x16xf32>
    %76 = vector.multi_reduction <add>, %75, %cst_23 [2] : vector<4x16x16xf32> to vector<4x16xf32>
    %77 = vector.shape_cast %76 : vector<4x16xf32> to vector<4x16x1xf32>
    %78 = tpu.reciprocal %77 {approx = true} : vector<4x16x1xf32> -> vector<4x16x1xf32>
    %79 = vector.broadcast %78 : vector<4x16x1xf32> to vector<4x16x16xf32>
    %80 = arith.mulf %75, %79 : vector<4x16x16xf32>
    %81 = arith.truncf %80 : vector<4x16x16xf32> to vector<4x16x16xbf16>
    %c0_24 = arith.constant 0 : index
    %c0_25 = arith.constant 0 : index
    %c0_26 = arith.constant 0 : index
    %c0_27 = arith.constant 0 : index
    %82 = vector.load %arg4[%c0_24, %c0_25, %c0_26, %c0_27] : memref<2x4x8x32xbf16, #tpu.memory_space<vmem>>, vector<1x4x8x32xbf16>
    %83 = vector.shape_cast %82 : vector<1x4x8x32xbf16> to vector<4x8x32xbf16>
    %84 = vector.extract_strided_slice %81 {offsets = [0, 0, 0], sizes = [1, 16, 16], strides = [1, 1, 1]} : vector<4x16x16xbf16> to vector<1x16x16xbf16>
    %85 = vector.shape_cast %84 : vector<1x16x16xbf16> to vector<16x16xbf16>
    %86 = vector.extract_strided_slice %50 {offsets = [0, 0], sizes = [16, 8], strides = [1, 1]} : vector<16x32xbf16> to vector<16x8xbf16>
    %cst_28 = arith.constant dense<0.000000e+00> : vector<16x8xf32>
    %87 = tpu.matmul %85, %86, %cst_28 {dimension_numbers = #tpu.dot_dimension_numbers<[1], [0], [0], [1], [0, 0, 1, 1], [], []>} : vector<16x16xbf16>, vector<16x8xbf16>, vector<16x8xf32> -> vector<16x8xf32>
    %88 = arith.truncf %87 : vector<16x8xf32> to vector<16x8xbf16>
    %89 = vector.extract_strided_slice %83 {offsets = [0, 0, 0], sizes = [1, 8, 32], strides = [1, 1, 1]} : vector<4x8x32xbf16> to vector<1x8x32xbf16>
    %90 = vector.shape_cast %89 : vector<1x8x32xbf16> to vector<8x32xbf16>
    %cst_29 = arith.constant dense<0.000000e+00> : vector<16x32xf32>
    %91 = tpu.matmul %88, %90, %cst_29 {dimension_numbers = #tpu.dot_dimension_numbers<[1], [0], [0], [1], [0, 0, 1, 1], [], []>} : vector<16x8xbf16>, vector<8x32xbf16>, vector<16x32xf32> -> vector<16x32xf32>
    %92 = vector.extract_strided_slice %81 {offsets = [1, 0, 0], sizes = [1, 16, 16], strides = [1, 1, 1]} : vector<4x16x16xbf16> to vector<1x16x16xbf16>
    %93 = vector.shape_cast %92 : vector<1x16x16xbf16> to vector<16x16xbf16>
    %94 = vector.extract_strided_slice %50 {offsets = [0, 8], sizes = [16, 8], strides = [1, 1]} : vector<16x32xbf16> to vector<16x8xbf16>
    %cst_30 = arith.constant dense<0.000000e+00> : vector<16x8xf32>
    %95 = tpu.matmul %93, %94, %cst_30 {dimension_numbers = #tpu.dot_dimension_numbers<[1], [0], [0], [1], [0, 0, 1, 1], [], []>} : vector<16x16xbf16>, vector<16x8xbf16>, vector<16x8xf32> -> vector<16x8xf32>
    %96 = arith.truncf %95 : vector<16x8xf32> to vector<16x8xbf16>
    %97 = vector.extract_strided_slice %83 {offsets = [1, 0, 0], sizes = [1, 8, 32], strides = [1, 1, 1]} : vector<4x8x32xbf16> to vector<1x8x32xbf16>
    %98 = vector.shape_cast %97 : vector<1x8x32xbf16> to vector<8x32xbf16>
    %cst_31 = arith.constant dense<0.000000e+00> : vector<16x32xf32>
    %99 = tpu.matmul %96, %98, %cst_31 {dimension_numbers = #tpu.dot_dimension_numbers<[1], [0], [0], [1], [0, 0, 1, 1], [], []>} : vector<16x8xbf16>, vector<8x32xbf16>, vector<16x32xf32> -> vector<16x32xf32>
    %100 = arith.addf %91, %99 : vector<16x32xf32>
    %101 = vector.extract_strided_slice %81 {offsets = [2, 0, 0], sizes = [1, 16, 16], strides = [1, 1, 1]} : vector<4x16x16xbf16> to vector<1x16x16xbf16>
    %102 = vector.shape_cast %101 : vector<1x16x16xbf16> to vector<16x16xbf16>
    %103 = vector.extract_strided_slice %50 {offsets = [0, 16], sizes = [16, 8], strides = [1, 1]} : vector<16x32xbf16> to vector<16x8xbf16>
    %cst_32 = arith.constant dense<0.000000e+00> : vector<16x8xf32>
    %104 = tpu.matmul %102, %103, %cst_32 {dimension_numbers = #tpu.dot_dimension_numbers<[1], [0], [0], [1], [0, 0, 1, 1], [], []>} : vector<16x16xbf16>, vector<16x8xbf16>, vector<16x8xf32> -> vector<16x8xf32>
    %105 = arith.truncf %104 : vector<16x8xf32> to vector<16x8xbf16>
    %106 = vector.extract_strided_slice %83 {offsets = [2, 0, 0], sizes = [1, 8, 32], strides = [1, 1, 1]} : vector<4x8x32xbf16> to vector<1x8x32xbf16>
    %107 = vector.shape_cast %106 : vector<1x8x32xbf16> to vector<8x32xbf16>
    %cst_33 = arith.constant dense<0.000000e+00> : vector<16x32xf32>
    %108 = tpu.matmul %105, %107, %cst_33 {dimension_numbers = #tpu.dot_dimension_numbers<[1], [0], [0], [1], [0, 0, 1, 1], [], []>} : vector<16x8xbf16>, vector<8x32xbf16>, vector<16x32xf32> -> vector<16x32xf32>
    %109 = arith.addf %100, %108 : vector<16x32xf32>
    %110 = vector.extract_strided_slice %81 {offsets = [3, 0, 0], sizes = [1, 16, 16], strides = [1, 1, 1]} : vector<4x16x16xbf16> to vector<1x16x16xbf16>
    %111 = vector.shape_cast %110 : vector<1x16x16xbf16> to vector<16x16xbf16>
    %112 = vector.extract_strided_slice %50 {offsets = [0, 24], sizes = [16, 8], strides = [1, 1]} : vector<16x32xbf16> to vector<16x8xbf16>
    %cst_34 = arith.constant dense<0.000000e+00> : vector<16x8xf32>
    %113 = tpu.matmul %111, %112, %cst_34 {dimension_numbers = #tpu.dot_dimension_numbers<[1], [0], [0], [1], [0, 0, 1, 1], [], []>} : vector<16x16xbf16>, vector<16x8xbf16>, vector<16x8xf32> -> vector<16x8xf32>
    %114 = arith.truncf %113 : vector<16x8xf32> to vector<16x8xbf16>
    %115 = vector.extract_strided_slice %83 {offsets = [3, 0, 0], sizes = [1, 8, 32], strides = [1, 1, 1]} : vector<4x8x32xbf16> to vector<1x8x32xbf16>
    %116 = vector.shape_cast %115 : vector<1x8x32xbf16> to vector<8x32xbf16>
    %cst_35 = arith.constant dense<0.000000e+00> : vector<16x32xf32>
    %117 = tpu.matmul %114, %116, %cst_35 {dimension_numbers = #tpu.dot_dimension_numbers<[1], [0], [0], [1], [0, 0, 1, 1], [], []>} : vector<16x8xbf16>, vector<8x32xbf16>, vector<16x32xf32> -> vector<16x32xf32>
    %118 = arith.addf %109, %117 : vector<16x32xf32>
    %119 = arith.addf %0, %118 : vector<16x32xf32>
    %120 = vector.broadcast %6 : vector<1x32xf32> to vector<16x32xf32>
    %121 = arith.addf %119, %120 : vector<16x32xf32>
    %cst_36 = arith.constant dense<0.000000e+00> : vector<16xf32>
    %122 = vector.multi_reduction <add>, %121, %cst_36 [1] : vector<16x32xf32> to vector<16xf32>
    %123 = vector.shape_cast %122 : vector<16xf32> to vector<16x1xf32>
    %cst_37 = arith.constant 3.200000e+01 : f32
    %124 = vector.broadcast %cst_37 : f32 to vector<16x1xf32>
    %125 = arith.divf %123, %124 : vector<16x1xf32>
    %126 = arith.mulf %121, %121 : vector<16x32xf32>
    %cst_38 = arith.constant dense<0.000000e+00> : vector<16xf32>
    %127 = vector.multi_reduction <add>, %126, %cst_38 [1] : vector<16x32xf32> to vector<16xf32>
    %128 = vector.shape_cast %127 : vector<16xf32> to vector<16x1xf32>
    %cst_39 = arith.constant 3.200000e+01 : f32
    %129 = vector.broadcast %cst_39 : f32 to vector<16x1xf32>
    %130 = arith.divf %128, %129 : vector<16x1xf32>
    %131 = arith.mulf %125, %125 : vector<16x1xf32>
    %132 = arith.subf %130, %131 : vector<16x1xf32>
    %133 = vector.broadcast %125 : vector<16x1xf32> to vector<16x32xf32>
    %134 = arith.subf %121, %133 : vector<16x32xf32>
    %cst_40 = arith.constant 9.99999974E-6 : f32
    %135 = vector.broadcast %cst_40 : f32 to vector<16x1xf32>
    %136 = arith.addf %132, %135 : vector<16x1xf32>
    %137 = math.rsqrt %136 : vector<16x1xf32>
    %138 = vector.broadcast %137 : vector<16x1xf32> to vector<16x32xf32>
    %139 = arith.mulf %134, %138 : vector<16x32xf32>
    %140 = vector.broadcast %11 : vector<1x32xf32> to vector<16x32xf32>
    %141 = arith.mulf %139, %140 : vector<16x32xf32>
    %142 = vector.broadcast %12 : vector<1x32xf32> to vector<16x32xf32>
    %143 = arith.addf %141, %142 : vector<16x32xf32>
    %144 = arith.truncf %143 : vector<16x32xf32> to vector<16x32xbf16>
    %c0_41 = arith.constant 0 : index
    %c0_42 = arith.constant 0 : index
    %c0_43 = arith.constant 0 : index
    %145 = vector.load %arg5[%c0_41, %c0_42, %c0_43] : memref<2x32x64xbf16, #tpu.memory_space<vmem>>, vector<1x32x64xbf16>
    %146 = vector.shape_cast %145 : vector<1x32x64xbf16> to vector<32x64xbf16>
    %cst_44 = arith.constant dense<0.000000e+00> : vector<16x64xf32>
    %147 = tpu.matmul %144, %146, %cst_44 {dimension_numbers = #tpu.dot_dimension_numbers<[1], [0], [0], [1], [0, 0, 1, 1], [], []>} : vector<16x32xbf16>, vector<32x64xbf16>, vector<16x64xf32> -> vector<16x64xf32>
    %148 = vector.broadcast %7 : vector<1x64xf32> to vector<16x64xf32>
    %149 = arith.addf %147, %148 : vector<16x64xf32>
    %150 = arith.mulf %149, %149 : vector<16x64xf32>
    %151 = arith.mulf %149, %150 : vector<16x64xf32>
    %cst_45 = arith.constant 4.471500e-02 : f32
    %152 = vector.broadcast %cst_45 : f32 to vector<16x64xf32>
    %153 = arith.mulf %152, %151 : vector<16x64xf32>
    %154 = arith.addf %149, %153 : vector<16x64xf32>
    %cst_46 = arith.constant 0.797884583 : f32
    %155 = vector.broadcast %cst_46 : f32 to vector<16x64xf32>
    %156 = arith.mulf %155, %154 : vector<16x64xf32>
    %157 = math.tanh %156 : vector<16x64xf32>
    %cst_47 = arith.constant 1.000000e+00 : f32
    %158 = vector.broadcast %cst_47 : f32 to vector<16x64xf32>
    %159 = arith.addf %158, %157 : vector<16x64xf32>
    %cst_48 = arith.constant 5.000000e-01 : f32
    %160 = vector.broadcast %cst_48 : f32 to vector<16x64xf32>
    %161 = arith.mulf %160, %159 : vector<16x64xf32>
    %162 = arith.mulf %149, %161 : vector<16x64xf32>
    %163 = arith.truncf %162 : vector<16x64xf32> to vector<16x64xbf16>
    %c0_49 = arith.constant 0 : index
    %c0_50 = arith.constant 0 : index
    %c0_51 = arith.constant 0 : index
    %164 = vector.load %arg6[%c0_49, %c0_50, %c0_51] : memref<2x64x32xbf16, #tpu.memory_space<vmem>>, vector<1x64x32xbf16>
    %165 = vector.shape_cast %164 : vector<1x64x32xbf16> to vector<64x32xbf16>
    %cst_52 = arith.constant dense<0.000000e+00> : vector<16x32xf32>
    %166 = tpu.matmul %163, %165, %cst_52 {dimension_numbers = #tpu.dot_dimension_numbers<[1], [0], [0], [1], [0, 0, 1, 1], [], []>} : vector<16x64xbf16>, vector<64x32xbf16>, vector<16x32xf32> -> vector<16x32xf32>
    %167 = arith.addf %121, %166 : vector<16x32xf32>
    %168 = vector.broadcast %8 : vector<1x32xf32> to vector<16x32xf32>
    %169 = arith.addf %167, %168 : vector<16x32xf32>
    %c3 = arith.constant 3 : index
    %c0_53 = arith.constant 0 : index
    %170 = vector.load %arg8[%c3, %c0_53] : memref<7x128xf32, #tpu.memory_space<vmem>>, vector<1x128xf32>
    %c4 = arith.constant 4 : index
    %c0_54 = arith.constant 0 : index
    %171 = vector.load %arg8[%c4, %c0_54] : memref<7x128xf32, #tpu.memory_space<vmem>>, vector<1x128xf32>
    %c5 = arith.constant 5 : index
    %c0_55 = arith.constant 0 : index
    %172 = vector.load %arg8[%c5, %c0_55] : memref<7x128xf32, #tpu.memory_space<vmem>>, vector<1x128xf32>
    %173 = vector.extract_strided_slice %170 {offsets = [0, 0], sizes = [1, 96], strides = [1, 1]} : vector<1x128xf32> to vector<1x96xf32>
    %174 = vector.extract_strided_slice %170 {offsets = [0, 96], sizes = [1, 32], strides = [1, 1]} : vector<1x128xf32> to vector<1x32xf32>
    %175 = vector.extract_strided_slice %171 {offsets = [0, 0], sizes = [1, 64], strides = [1, 1]} : vector<1x128xf32> to vector<1x64xf32>
    %176 = vector.extract_strided_slice %171 {offsets = [0, 64], sizes = [1, 32], strides = [1, 1]} : vector<1x128xf32> to vector<1x32xf32>
    %177 = vector.extract_strided_slice %172 {offsets = [0, 0], sizes = [1, 32], strides = [1, 1]} : vector<1x128xf32> to vector<1x32xf32>
    %178 = vector.extract_strided_slice %172 {offsets = [0, 32], sizes = [1, 32], strides = [1, 1]} : vector<1x128xf32> to vector<1x32xf32>
    %179 = vector.extract_strided_slice %172 {offsets = [0, 64], sizes = [1, 32], strides = [1, 1]} : vector<1x128xf32> to vector<1x32xf32>
    %180 = vector.extract_strided_slice %172 {offsets = [0, 96], sizes = [1, 32], strides = [1, 1]} : vector<1x128xf32> to vector<1x32xf32>
    %cst_56 = arith.constant dense<0.000000e+00> : vector<16xf32>
    %181 = vector.multi_reduction <add>, %169, %cst_56 [1] : vector<16x32xf32> to vector<16xf32>
    %182 = vector.shape_cast %181 : vector<16xf32> to vector<16x1xf32>
    %cst_57 = arith.constant 3.200000e+01 : f32
    %183 = vector.broadcast %cst_57 : f32 to vector<16x1xf32>
    %184 = arith.divf %182, %183 : vector<16x1xf32>
    %185 = arith.mulf %169, %169 : vector<16x32xf32>
    %cst_58 = arith.constant dense<0.000000e+00> : vector<16xf32>
    %186 = vector.multi_reduction <add>, %185, %cst_58 [1] : vector<16x32xf32> to vector<16xf32>
    %187 = vector.shape_cast %186 : vector<16xf32> to vector<16x1xf32>
    %cst_59 = arith.constant 3.200000e+01 : f32
    %188 = vector.broadcast %cst_59 : f32 to vector<16x1xf32>
    %189 = arith.divf %187, %188 : vector<16x1xf32>
    %190 = arith.mulf %184, %184 : vector<16x1xf32>
    %191 = arith.subf %189, %190 : vector<16x1xf32>
    %192 = vector.broadcast %184 : vector<16x1xf32> to vector<16x32xf32>
    %193 = arith.subf %169, %192 : vector<16x32xf32>
    %cst_60 = arith.constant 9.99999974E-6 : f32
    %194 = vector.broadcast %cst_60 : f32 to vector<16x1xf32>
    %195 = arith.addf %191, %194 : vector<16x1xf32>
    %196 = math.rsqrt %195 : vector<16x1xf32>
    %197 = vector.broadcast %196 : vector<16x1xf32> to vector<16x32xf32>
    %198 = arith.mulf %193, %197 : vector<16x32xf32>
    %199 = vector.broadcast %177 : vector<1x32xf32> to vector<16x32xf32>
    %200 = arith.mulf %198, %199 : vector<16x32xf32>
    %201 = vector.broadcast %178 : vector<1x32xf32> to vector<16x32xf32>
    %202 = arith.addf %200, %201 : vector<16x32xf32>
    %203 = arith.truncf %202 : vector<16x32xf32> to vector<16x32xbf16>
    %c1_61 = arith.constant 1 : index
    %c0_62 = arith.constant 0 : index
    %c0_63 = arith.constant 0 : index
    %204 = vector.load %arg3[%c1_61, %c0_62, %c0_63] : memref<2x32x96xbf16, #tpu.memory_space<vmem>>, vector<1x32x96xbf16>
    %205 = vector.shape_cast %204 : vector<1x32x96xbf16> to vector<32x96xbf16>
    %cst_64 = arith.constant dense<0.000000e+00> : vector<16x96xf32>
    %206 = tpu.matmul %203, %205, %cst_64 {dimension_numbers = #tpu.dot_dimension_numbers<[1], [0], [0], [1], [0, 0, 1, 1], [], []>} : vector<16x32xbf16>, vector<32x96xbf16>, vector<16x96xf32> -> vector<16x96xf32>
    %207 = vector.broadcast %173 : vector<1x96xf32> to vector<16x96xf32>
    %208 = arith.addf %206, %207 : vector<16x96xf32>
    %209 = vector.extract_strided_slice %208 {offsets = [0, 32], sizes = [16, 64], strides = [1, 1]} : vector<16x96xf32> to vector<16x64xf32>
    %c0_65 = arith.constant 0 : index
    %c64 = arith.constant 64 : index
    %210 = vector.load %arg10[%c0_65, %c64] : memref<16x128xf32, #tpu.memory_space<vmem>>, vector<16x64xf32>
    tpu.vector_store %arg10[%c0_65, %c64], %209 {strides = array<i32>} : memref<16x128xf32, #tpu.memory_space<vmem>>, vector<16x64xf32>,
    %211 = vector.extract_strided_slice %208 {offsets = [0, 0], sizes = [16, 32], strides = [1, 1]} : vector<16x96xf32> to vector<16x32xf32>
    %cst_66 = arith.constant 0.353553385 : f32
    %212 = vector.broadcast %cst_66 : f32 to vector<16x32xf32>
    %213 = arith.mulf %211, %212 : vector<16x32xf32>
    %214 = arith.truncf %213 : vector<16x32xf32> to vector<16x32xbf16>
    %215 = vector.extract_strided_slice %208 {offsets = [0, 32], sizes = [16, 32], strides = [1, 1]} : vector<16x96xf32> to vector<16x32xf32>
    %216 = arith.truncf %215 : vector<16x32xf32> to vector<16x32xbf16>
    %217 = vector.extract_strided_slice %208 {offsets = [0, 64], sizes = [16, 32], strides = [1, 1]} : vector<16x96xf32> to vector<16x32xf32>
    %218 = arith.truncf %217 : vector<16x32xf32> to vector<16x32xbf16>
    %219 = vector.extract_strided_slice %214 {offsets = [0, 0], sizes = [16, 8], strides = [1, 1]} : vector<16x32xbf16> to vector<16x8xbf16>
    %220 = vector.extract_strided_slice %216 {offsets = [0, 0], sizes = [16, 8], strides = [1, 1]} : vector<16x32xbf16> to vector<16x8xbf16>
    %cst_67 = arith.constant dense<0.000000e+00> : vector<16x16xf32>
    %221 = tpu.matmul %219, %220, %cst_67 {dimension_numbers = #tpu.dot_dimension_numbers<[1], [1], [0], [0], [0, 0, 1, 0], [], []>} : vector<16x8xbf16>, vector<16x8xbf16>, vector<16x16xf32> -> vector<16x16xf32>
    %222 = vector.shape_cast %221 : vector<16x16xf32> to vector<1x16x16xf32>
    %223 = vector.extract_strided_slice %214 {offsets = [0, 8], sizes = [16, 8], strides = [1, 1]} : vector<16x32xbf16> to vector<16x8xbf16>
    %224 = vector.extract_strided_slice %216 {offsets = [0, 8], sizes = [16, 8], strides = [1, 1]} : vector<16x32xbf16> to vector<16x8xbf16>
    %cst_68 = arith.constant dense<0.000000e+00> : vector<16x16xf32>
    %225 = tpu.matmul %223, %224, %cst_68 {dimension_numbers = #tpu.dot_dimension_numbers<[1], [1], [0], [0], [0, 0, 1, 0], [], []>} : vector<16x8xbf16>, vector<16x8xbf16>, vector<16x16xf32> -> vector<16x16xf32>
    %226 = vector.shape_cast %225 : vector<16x16xf32> to vector<1x16x16xf32>
    %227 = vector.extract_strided_slice %214 {offsets = [0, 16], sizes = [16, 8], strides = [1, 1]} : vector<16x32xbf16> to vector<16x8xbf16>
    %228 = vector.extract_strided_slice %216 {offsets = [0, 16], sizes = [16, 8], strides = [1, 1]} : vector<16x32xbf16> to vector<16x8xbf16>
    %cst_69 = arith.constant dense<0.000000e+00> : vector<16x16xf32>
    %229 = tpu.matmul %227, %228, %cst_69 {dimension_numbers = #tpu.dot_dimension_numbers<[1], [1], [0], [0], [0, 0, 1, 0], [], []>} : vector<16x8xbf16>, vector<16x8xbf16>, vector<16x16xf32> -> vector<16x16xf32>
    %230 = vector.shape_cast %229 : vector<16x16xf32> to vector<1x16x16xf32>
    %231 = vector.extract_strided_slice %214 {offsets = [0, 24], sizes = [16, 8], strides = [1, 1]} : vector<16x32xbf16> to vector<16x8xbf16>
    %232 = vector.extract_strided_slice %216 {offsets = [0, 24], sizes = [16, 8], strides = [1, 1]} : vector<16x32xbf16> to vector<16x8xbf16>
    %cst_70 = arith.constant dense<0.000000e+00> : vector<16x16xf32>
    %233 = tpu.matmul %231, %232, %cst_70 {dimension_numbers = #tpu.dot_dimension_numbers<[1], [1], [0], [0], [0, 0, 1, 0], [], []>} : vector<16x8xbf16>, vector<16x8xbf16>, vector<16x16xf32> -> vector<16x16xf32>
    %234 = vector.shape_cast %233 : vector<16x16xf32> to vector<1x16x16xf32>
    %235 = tpu.concatenate %222, %226, %230, %234 in 0 : vector<1x16x16xf32>, vector<1x16x16xf32>, vector<1x16x16xf32>, vector<1x16x16xf32> -> vector<4x16x16xf32>
    %236 = vector.shape_cast %1 : vector<16x16xf32> to vector<1x16x16xf32>
    %237 = vector.broadcast %236 : vector<1x16x16xf32> to vector<4x16x16xf32>
    %238 = arith.addf %235, %237 : vector<4x16x16xf32>
    %cst_71 = arith.constant dense<0xFF800000> : vector<4x16xf32>
    %239 = vector.multi_reduction <maximumf>, %238, %cst_71 [2] : vector<4x16x16xf32> to vector<4x16xf32>
    %240 = vector.shape_cast %239 : vector<4x16xf32> to vector<4x16x1xf32>
    %241 = vector.broadcast %240 : vector<4x16x1xf32> to vector<4x16x16xf32>
    %242 = arith.subf %238, %241 : vector<4x16x16xf32>
    %243 = math.exp %242 : vector<4x16x16xf32>
    %cst_72 = arith.constant dense<0.000000e+00> : vector<4x16xf32>
    %244 = vector.multi_reduction <add>, %243, %cst_72 [2] : vector<4x16x16xf32> to vector<4x16xf32>
    %245 = vector.shape_cast %244 : vector<4x16xf32> to vector<4x16x1xf32>
    %246 = tpu.reciprocal %245 {approx = true} : vector<4x16x1xf32> -> vector<4x16x1xf32>
    %247 = vector.broadcast %246 : vector<4x16x1xf32> to vector<4x16x16xf32>
    %248 = arith.mulf %243, %247 : vector<4x16x16xf32>
    %249 = arith.truncf %248 : vector<4x16x16xf32> to vector<4x16x16xbf16>
    %c1_73 = arith.constant 1 : index
    %c0_74 = arith.constant 0 : index
    %c0_75 = arith.constant 0 : index
    %c0_76 = arith.constant 0 : index
    %250 = vector.load %arg4[%c1_73, %c0_74, %c0_75, %c0_76] : memref<2x4x8x32xbf16, #tpu.memory_space<vmem>>, vector<1x4x8x32xbf16>
    %251 = vector.shape_cast %250 : vector<1x4x8x32xbf16> to vector<4x8x32xbf16>
    %252 = vector.extract_strided_slice %249 {offsets = [0, 0, 0], sizes = [1, 16, 16], strides = [1, 1, 1]} : vector<4x16x16xbf16> to vector<1x16x16xbf16>
    %253 = vector.shape_cast %252 : vector<1x16x16xbf16> to vector<16x16xbf16>
    %254 = vector.extract_strided_slice %218 {offsets = [0, 0], sizes = [16, 8], strides = [1, 1]} : vector<16x32xbf16> to vector<16x8xbf16>
    %cst_77 = arith.constant dense<0.000000e+00> : vector<16x8xf32>
    %255 = tpu.matmul %253, %254, %cst_77 {dimension_numbers = #tpu.dot_dimension_numbers<[1], [0], [0], [1], [0, 0, 1, 1], [], []>} : vector<16x16xbf16>, vector<16x8xbf16>, vector<16x8xf32> -> vector<16x8xf32>
    %256 = arith.truncf %255 : vector<16x8xf32> to vector<16x8xbf16>
    %257 = vector.extract_strided_slice %251 {offsets = [0, 0, 0], sizes = [1, 8, 32], strides = [1, 1, 1]} : vector<4x8x32xbf16> to vector<1x8x32xbf16>
    %258 = vector.shape_cast %257 : vector<1x8x32xbf16> to vector<8x32xbf16>
    %cst_78 = arith.constant dense<0.000000e+00> : vector<16x32xf32>
    %259 = tpu.matmul %256, %258, %cst_78 {dimension_numbers = #tpu.dot_dimension_numbers<[1], [0], [0], [1], [0, 0, 1, 1], [], []>} : vector<16x8xbf16>, vector<8x32xbf16>, vector<16x32xf32> -> vector<16x32xf32>
    %260 = vector.extract_strided_slice %249 {offsets = [1, 0, 0], sizes = [1, 16, 16], strides = [1, 1, 1]} : vector<4x16x16xbf16> to vector<1x16x16xbf16>
    %261 = vector.shape_cast %260 : vector<1x16x16xbf16> to vector<16x16xbf16>
    %262 = vector.extract_strided_slice %218 {offsets = [0, 8], sizes = [16, 8], strides = [1, 1]} : vector<16x32xbf16> to vector<16x8xbf16>
    %cst_79 = arith.constant dense<0.000000e+00> : vector<16x8xf32>
    %263 = tpu.matmul %261, %262, %cst_79 {dimension_numbers = #tpu.dot_dimension_numbers<[1], [0], [0], [1], [0, 0, 1, 1], [], []>} : vector<16x16xbf16>, vector<16x8xbf16>, vector<16x8xf32> -> vector<16x8xf32>
    %264 = arith.truncf %263 : vector<16x8xf32> to vector<16x8xbf16>
    %265 = vector.extract_strided_slice %251 {offsets = [1, 0, 0], sizes = [1, 8, 32], strides = [1, 1, 1]} : vector<4x8x32xbf16> to vector<1x8x32xbf16>
    %266 = vector.shape_cast %265 : vector<1x8x32xbf16> to vector<8x32xbf16>
    %cst_80 = arith.constant dense<0.000000e+00> : vector<16x32xf32>
    %267 = tpu.matmul %264, %266, %cst_80 {dimension_numbers = #tpu.dot_dimension_numbers<[1], [0], [0], [1], [0, 0, 1, 1], [], []>} : vector<16x8xbf16>, vector<8x32xbf16>, vector<16x32xf32> -> vector<16x32xf32>
    %268 = arith.addf %259, %267 : vector<16x32xf32>
    %269 = vector.extract_strided_slice %249 {offsets = [2, 0, 0], sizes = [1, 16, 16], strides = [1, 1, 1]} : vector<4x16x16xbf16> to vector<1x16x16xbf16>
    %270 = vector.shape_cast %269 : vector<1x16x16xbf16> to vector<16x16xbf16>
    %271 = vector.extract_strided_slice %218 {offsets = [0, 16], sizes = [16, 8], strides = [1, 1]} : vector<16x32xbf16> to vector<16x8xbf16>
    %cst_81 = arith.constant dense<0.000000e+00> : vector<16x8xf32>
    %272 = tpu.matmul %270, %271, %cst_81 {dimension_numbers = #tpu.dot_dimension_numbers<[1], [0], [0], [1], [0, 0, 1, 1], [], []>} : vector<16x16xbf16>, vector<16x8xbf16>, vector<16x8xf32> -> vector<16x8xf32>
    %273 = arith.truncf %272 : vector<16x8xf32> to vector<16x8xbf16>
    %274 = vector.extract_strided_slice %251 {offsets = [2, 0, 0], sizes = [1, 8, 32], strides = [1, 1, 1]} : vector<4x8x32xbf16> to vector<1x8x32xbf16>
    %275 = vector.shape_cast %274 : vector<1x8x32xbf16> to vector<8x32xbf16>
    %cst_82 = arith.constant dense<0.000000e+00> : vector<16x32xf32>
    %276 = tpu.matmul %273, %275, %cst_82 {dimension_numbers = #tpu.dot_dimension_numbers<[1], [0], [0], [1], [0, 0, 1, 1], [], []>} : vector<16x8xbf16>, vector<8x32xbf16>, vector<16x32xf32> -> vector<16x32xf32>
    %277 = arith.addf %268, %276 : vector<16x32xf32>
    %278 = vector.extract_strided_slice %249 {offsets = [3, 0, 0], sizes = [1, 16, 16], strides = [1, 1, 1]} : vector<4x16x16xbf16> to vector<1x16x16xbf16>
    %279 = vector.shape_cast %278 : vector<1x16x16xbf16> to vector<16x16xbf16>
    %280 = vector.extract_strided_slice %218 {offsets = [0, 24], sizes = [16, 8], strides = [1, 1]} : vector<16x32xbf16> to vector<16x8xbf16>
    %cst_83 = arith.constant dense<0.000000e+00> : vector<16x8xf32>
    %281 = tpu.matmul %279, %280, %cst_83 {dimension_numbers = #tpu.dot_dimension_numbers<[1], [0], [0], [1], [0, 0, 1, 1], [], []>} : vector<16x16xbf16>, vector<16x8xbf16>, vector<16x8xf32> -> vector<16x8xf32>
    %282 = arith.truncf %281 : vector<16x8xf32> to vector<16x8xbf16>
    %283 = vector.extract_strided_slice %251 {offsets = [3, 0, 0], sizes = [1, 8, 32], strides = [1, 1, 1]} : vector<4x8x32xbf16> to vector<1x8x32xbf16>
    %284 = vector.shape_cast %283 : vector<1x8x32xbf16> to vector<8x32xbf16>
    %cst_84 = arith.constant dense<0.000000e+00> : vector<16x32xf32>
    %285 = tpu.matmul %282, %284, %cst_84 {dimension_numbers = #tpu.dot_dimension_numbers<[1], [0], [0], [1], [0, 0, 1, 1], [], []>} : vector<16x8xbf16>, vector<8x32xbf16>, vector<16x32xf32> -> vector<16x32xf32>
    %286 = arith.addf %277, %285 : vector<16x32xf32>
    %287 = arith.addf %169, %286 : vector<16x32xf32>
    %288 = vector.broadcast %174 : vector<1x32xf32> to vector<16x32xf32>
    %289 = arith.addf %287, %288 : vector<16x32xf32>
    %cst_85 = arith.constant dense<0.000000e+00> : vector<16xf32>
    %290 = vector.multi_reduction <add>, %289, %cst_85 [1] : vector<16x32xf32> to vector<16xf32>
    %291 = vector.shape_cast %290 : vector<16xf32> to vector<16x1xf32>
    %cst_86 = arith.constant 3.200000e+01 : f32
    %292 = vector.broadcast %cst_86 : f32 to vector<16x1xf32>
    %293 = arith.divf %291, %292 : vector<16x1xf32>
    %294 = arith.mulf %289, %289 : vector<16x32xf32>
    %cst_87 = arith.constant dense<0.000000e+00> : vector<16xf32>
    %295 = vector.multi_reduction <add>, %294, %cst_87 [1] : vector<16x32xf32> to vector<16xf32>
    %296 = vector.shape_cast %295 : vector<16xf32> to vector<16x1xf32>
    %cst_88 = arith.constant 3.200000e+01 : f32
    %297 = vector.broadcast %cst_88 : f32 to vector<16x1xf32>
    %298 = arith.divf %296, %297 : vector<16x1xf32>
    %299 = arith.mulf %293, %293 : vector<16x1xf32>
    %300 = arith.subf %298, %299 : vector<16x1xf32>
    %301 = vector.broadcast %293 : vector<16x1xf32> to vector<16x32xf32>
    %302 = arith.subf %289, %301 : vector<16x32xf32>
    %cst_89 = arith.constant 9.99999974E-6 : f32
    %303 = vector.broadcast %cst_89 : f32 to vector<16x1xf32>
    %304 = arith.addf %300, %303 : vector<16x1xf32>
    %305 = math.rsqrt %304 : vector<16x1xf32>
    %306 = vector.broadcast %305 : vector<16x1xf32> to vector<16x32xf32>
    %307 = arith.mulf %302, %306 : vector<16x32xf32>
    %308 = vector.broadcast %179 : vector<1x32xf32> to vector<16x32xf32>
    %309 = arith.mulf %307, %308 : vector<16x32xf32>
    %310 = vector.broadcast %180 : vector<1x32xf32> to vector<16x32xf32>
    %311 = arith.addf %309, %310 : vector<16x32xf32>
    %312 = arith.truncf %311 : vector<16x32xf32> to vector<16x32xbf16>
    %c1_90 = arith.constant 1 : index
    %c0_91 = arith.constant 0 : index
    %c0_92 = arith.constant 0 : index
    %313 = vector.load %arg5[%c1_90, %c0_91, %c0_92] : memref<2x32x64xbf16, #tpu.memory_space<vmem>>, vector<1x32x64xbf16>
    %314 = vector.shape_cast %313 : vector<1x32x64xbf16> to vector<32x64xbf16>
    %cst_93 = arith.constant dense<0.000000e+00> : vector<16x64xf32>
    %315 = tpu.matmul %312, %314, %cst_93 {dimension_numbers = #tpu.dot_dimension_numbers<[1], [0], [0], [1], [0, 0, 1, 1], [], []>} : vector<16x32xbf16>, vector<32x64xbf16>, vector<16x64xf32> -> vector<16x64xf32>
    %316 = vector.broadcast %175 : vector<1x64xf32> to vector<16x64xf32>
    %317 = arith.addf %315, %316 : vector<16x64xf32>
    %318 = arith.mulf %317, %317 : vector<16x64xf32>
    %319 = arith.mulf %317, %318 : vector<16x64xf32>
    %cst_94 = arith.constant 4.471500e-02 : f32
    %320 = vector.broadcast %cst_94 : f32 to vector<16x64xf32>
    %321 = arith.mulf %320, %319 : vector<16x64xf32>
    %322 = arith.addf %317, %321 : vector<16x64xf32>
    %cst_95 = arith.constant 0.797884583 : f32
    %323 = vector.broadcast %cst_95 : f32 to vector<16x64xf32>
    %324 = arith.mulf %323, %322 : vector<16x64xf32>
    %325 = math.tanh %324 : vector<16x64xf32>
    %cst_96 = arith.constant 1.000000e+00 : f32
    %326 = vector.broadcast %cst_96 : f32 to vector<16x64xf32>
    %327 = arith.addf %326, %325 : vector<16x64xf32>
    %cst_97 = arith.constant 5.000000e-01 : f32
    %328 = vector.broadcast %cst_97 : f32 to vector<16x64xf32>
    %329 = arith.mulf %328, %327 : vector<16x64xf32>
    %330 = arith.mulf %317, %329 : vector<16x64xf32>
    %331 = arith.truncf %330 : vector<16x64xf32> to vector<16x64xbf16>
    %c1_98 = arith.constant 1 : index
    %c0_99 = arith.constant 0 : index
    %c0_100 = arith.constant 0 : index
    %332 = vector.load %arg6[%c1_98, %c0_99, %c0_100] : memref<2x64x32xbf16, #tpu.memory_space<vmem>>, vector<1x64x32xbf16>
    %333 = vector.shape_cast %332 : vector<1x64x32xbf16> to vector<64x32xbf16>
    %cst_101 = arith.constant dense<0.000000e+00> : vector<16x32xf32>
    %334 = tpu.matmul %331, %333, %cst_101 {dimension_numbers = #tpu.dot_dimension_numbers<[1], [0], [0], [1], [0, 0, 1, 1], [], []>} : vector<16x64xbf16>, vector<64x32xbf16>, vector<16x32xf32> -> vector<16x32xf32>
    %335 = arith.addf %289, %334 : vector<16x32xf32>
    %336 = vector.broadcast %176 : vector<1x32xf32> to vector<16x32xf32>
    %337 = arith.addf %335, %336 : vector<16x32xf32>
    %c6 = arith.constant 6 : index
    %c0_102 = arith.constant 0 : index
    %338 = vector.load %arg8[%c6, %c0_102] : memref<7x128xf32, #tpu.memory_space<vmem>>, vector<1x128xf32>
    %339 = vector.extract_strided_slice %338 {offsets = [0, 0], sizes = [1, 32], strides = [1, 1]} : vector<1x128xf32> to vector<1x32xf32>
    %340 = vector.extract_strided_slice %338 {offsets = [0, 32], sizes = [1, 32], strides = [1, 1]} : vector<1x128xf32> to vector<1x32xf32>
    %cst_103 = arith.constant dense<0.000000e+00> : vector<16xf32>
    %341 = vector.multi_reduction <add>, %337, %cst_103 [1] : vector<16x32xf32> to vector<16xf32>
    %342 = vector.shape_cast %341 : vector<16xf32> to vector<16x1xf32>
    %cst_104 = arith.constant 3.200000e+01 : f32
    %343 = vector.broadcast %cst_104 : f32 to vector<16x1xf32>
    %344 = arith.divf %342, %343 : vector<16x1xf32>
    %345 = arith.mulf %337, %337 : vector<16x32xf32>
    %cst_105 = arith.constant dense<0.000000e+00> : vector<16xf32>
    %346 = vector.multi_reduction <add>, %345, %cst_105 [1] : vector<16x32xf32> to vector<16xf32>
    %347 = vector.shape_cast %346 : vector<16xf32> to vector<16x1xf32>
    %cst_106 = arith.constant 3.200000e+01 : f32
    %348 = vector.broadcast %cst_106 : f32 to vector<16x1xf32>
    %349 = arith.divf %347, %348 : vector<16x1xf32>
    %350 = arith.mulf %344, %344 : vector<16x1xf32>
    %351 = arith.subf %349, %350 : vector<16x1xf32>
    %352 = vector.broadcast %344 : vector<16x1xf32> to vector<16x32xf32>
    %353 = arith.subf %337, %352 : vector<16x32xf32>
    %cst_107 = arith.constant 9.99999974E-6 : f32
    %354 = vector.broadcast %cst_107 : f32 to vector<16x1xf32>
    %355 = arith.addf %351, %354 : vector<16x1xf32>
    %356 = math.rsqrt %355 : vector<16x1xf32>
    %357 = vector.broadcast %356 : vector<16x1xf32> to vector<16x32xf32>
    %358 = arith.mulf %353, %357 : vector<16x32xf32>
    %359 = vector.broadcast %339 : vector<1x32xf32> to vector<16x32xf32>
    %360 = arith.mulf %358, %359 : vector<16x32xf32>
    %361 = vector.broadcast %340 : vector<1x32xf32> to vector<16x32xf32>
    %362 = arith.addf %360, %361 : vector<16x32xf32>
    %363 = arith.truncf %362 : vector<16x32xf32> to vector<16x32xbf16>
    %c0_108 = arith.constant 0 : index
    %c0_109 = arith.constant 0 : index
    %364 = vector.load %arg7[%c0_108, %c0_109] : memref<32x256xbf16, #tpu.memory_space<vmem>>, vector<32x256xbf16>
    %cst_110 = arith.constant dense<0.000000e+00> : vector<16x256xf32>
    %365 = tpu.matmul %363, %364, %cst_110 {dimension_numbers = #tpu.dot_dimension_numbers<[1], [0], [0], [1], [0, 0, 1, 1], [], []>} : vector<16x32xbf16>, vector<32x256xbf16>, vector<16x256xf32> -> vector<16x256xf32>
    %c0_111 = arith.constant 0 : index
    %c0_112 = arith.constant 0 : index
    %366 = vector.load %arg9[%c0_111, %c0_112] : memref<16x256xf32, #tpu.memory_space<vmem>>, vector<16x256xf32>
    tpu.vector_store %arg9[%c0_111, %c0_112], %365 {strides = array<i32>} : memref<16x256xf32, #tpu.memory_space<vmem>>, vector<16x256xf32>,
    return
  }
  func.func @transform_0(%arg0: i32) -> (i32, i32) {
    %c0_i32 = arith.constant 0 : i32
    %c0_i32_0 = arith.constant 0 : i32
    %c0_i32_1 = arith.constant 0 : i32
    return %c0_i32, %c0_i32_0 : i32, i32
  }
  func.func @transform_1(%arg0: i32) -> (i32, i32) {
    %c0_i32 = arith.constant 0 : i32
    %c0_i32_0 = arith.constant 0 : i32
    %c0_i32_1 = arith.constant 0 : i32
    return %c0_i32, %c0_i32_0 : i32, i32
  }
  func.func @transform_2(%arg0: i32) -> (i32, i32, i32) {
    %c0_i32 = arith.constant 0 : i32
    %c0_i32_0 = arith.constant 0 : i32
    %c0_i32_1 = arith.constant 0 : i32
    %c0_i32_2 = arith.constant 0 : i32
    return %c0_i32, %c0_i32_0, %c0_i32_1 : i32, i32, i32
  }
  func.func @transform_3(%arg0: i32) -> (i32, i32, i32, i32) {
    %c0_i32 = arith.constant 0 : i32
    %c0_i32_0 = arith.constant 0 : i32
    %c0_i32_1 = arith.constant 0 : i32
    %c0_i32_2 = arith.constant 0 : i32
    %c0_i32_3 = arith.constant 0 : i32
    return %c0_i32, %c0_i32_0, %c0_i32_1, %c0_i32_2 : i32, i32, i32, i32
  }
  func.func @transform_4(%arg0: i32) -> (i32, i32, i32) {
    %c0_i32 = arith.constant 0 : i32
    %c0_i32_0 = arith.constant 0 : i32
    %c0_i32_1 = arith.constant 0 : i32
    %c0_i32_2 = arith.constant 0 : i32
    return %c0_i32, %c0_i32_0, %c0_i32_1 : i32, i32, i32
  }
  func.func @transform_5(%arg0: i32) -> (i32, i32, i32) {
    %c0_i32 = arith.constant 0 : i32
    %c0_i32_0 = arith.constant 0 : i32
    %c0_i32_1 = arith.constant 0 : i32
    %c0_i32_2 = arith.constant 0 : i32
    return %c0_i32, %c0_i32_0, %c0_i32_1 : i32, i32, i32
  }
  func.func @transform_6(%arg0: i32) -> (i32, i32) {
    %c0_i32 = arith.constant 0 : i32
    %c0_i32_0 = arith.constant 0 : i32
    %c0_i32_1 = arith.constant 0 : i32
    return %c0_i32, %c0_i32_0 : i32, i32
  }
  func.func @transform_7(%arg0: i32) -> (i32, i32) {
    %c0_i32 = arith.constant 0 : i32
    %c0_i32_0 = arith.constant 0 : i32
    %c0_i32_1 = arith.constant 0 : i32
    return %c0_i32, %c0_i32_0 : i32, i32
  }
  func.func @transform_8(%arg0: i32) -> (i32, i32) {
    %c0_i32 = arith.constant 0 : i32
    %c0_i32_0 = arith.constant 0 : i32
    %c0_i32_1 = arith.constant 0 : i32
    return %c0_i32, %c0_i32_0 : i32, i32
  }
  func.func @transform_9(%arg0: i32) -> (i32, i32) {
    %c0_i32 = arith.constant 0 : i32
    %c0_i32_0 = arith.constant 0 : i32
    %c0_i32_1 = arith.constant 0 : i32
    return %c0_i32, %c0_i32_0 : i32, i32
  }
}

</mosaic_0001>

<bundles_post_ra>
// kernel: _forward.1
= control target key start
LH: loop header
LB: loop body
LE: loop exit
PB: predicated region body
PF: predicated region fallthrough
CT: control target
= control target key end

     0   :  { %vm40_vm0 = vcmask 261120   ;;  %s3365_s0 = inlined_call_operand.vmem [shape: f32[16,32], index: 0, kind: input, shape index: {}]   ;;  %s3366_s1 = inlined_call_operand.vmem [shape: f32[16,16], index: 1, kind: input, shape index: {}]   ;;  %s3367_s2 = inlined_call_operand.vmem [shape: bf16[2,32,96], index: 2, kind: input, shape index: {}]   ;;  %s3368_s3 = inlined_call_operand.vmem [shape: bf16[2,4,8,32], index: 3, kind: input, shape index: {}]   ;;  %s3369_s4 = inlined_call_operand.vmem [shape: bf16[2,32,64], index: 4, kind: input, shape index: {}]   ;;  %s3370_s5 = inlined_call_operand.vmem [shape: bf16[2,64,32], index: 5, kind: input, shape index: {}]   ;;  %s3371_s6 = inlined_call_operand.vmem [shape: bf16[32,256], index: 6, kind: input, shape index: {}]   ;;  %s3372_s7 = inlined_call_operand.vmem [shape: f32[7,128], index: 7, kind: input, shape index: {}]   ;;  %s3373_s8 = inlined_call_operand.hbm [shape: f32[16,256], index: 8, kind: output, shape index: {0}]   ;;  %s3374_s9 = inlined_call_operand.vmem [shape: f32[16,128], index: 9, kind: output, shape index: {1}]  }
   0x1   :  { %v2825_v0 = vld [vmem:[%s3365_s0] sm:$0xff]  ;;  %v2830_v1 = vld [vmem:[%s3365_s0 + $0x8] sm:$0xff] }
   0x2   :  { %v41_v2 = vsel %vm40_vm0, %v2825_v0, 0.0  ;;  %v50_v3 = vmul.f32 %v2825_v0, %v2825_v0  ;;  %v44_v4 = vsel %vm40_vm0, %v2830_v1, 0.0  ;;  %v51_v5 = vmul.f32 %v2830_v1, %v2830_v1 }
   0x3   :  { %42 = vadd.xlane.f32.xlu0 %v41_v2 }
   0x4   :  { %v52_v6 = vsel %vm40_vm0, %v50_v3, 0.0  ;;  %v55_v7 = vsel %vm40_vm0, %v51_v5, 0.0 }
   0x5   :  { %53 = vadd.xlane.f32.xlu1 %v52_v6 }
   0x7   :  { %45 = vadd.xlane.f32.xlu0 %v44_v4 }
   0x9   :  { %56 = vadd.xlane.f32.xlu1 %v55_v7 }
   0xa   :  { %15 = vsyncpa [#allocation3], 0  ;;  %v2845_v8 = vld [vmem:[%s3372_s7 + $0x2] ss:$0 sm:$0xff]  ;;  %s2754_s14 = smov 96   ;;  %v2755_v10 = vmov 0.0  }
   0xb   :  { %v2616_v9 = vld [vmem:[%s3367_s2] sm:$0xff]   ;;  %2398 = vmatprep.subr.bf16.mxu0 %v2755_v10  ;;  %2406 = vmatprep.subr.bf16.mxu1 %v2755_v10  ;;  %v2617_v11 = vld [vmem:[%s3367_s2 + $0x8] sm:$0xff]   ;;  %vm2756_vm1 = vmmov 0   ;;  %s2757_s21 = smov 80   ;;  %s2758_s22 = smov 88   ;;  %vm167_vm2 = vcmask 64512  }
   0xc   :  { %2399 = vmatpush3.bf16.msra.mxu0 %v2616_v9  ;;  %2402 = vmatprep.mubr.msk.bf16.mxu0 %vm2756_vm1, %v2755_v10  ;;  %v2873_v38 = vld [vmem:[%s3372_s7] ss:$0 sm:$0xff]  ;;  %s2759_s23 = smov 72   ;;  %s2760_s24 = smov 120   ;;  %v2926_v62 = vld [vmem:[%s3366_s1 + $0x8] sm:$0xff]  ;;  %vm377_vm3 = vcmask 130048  }
   0xd   :  { %2400 = vmatprep.subr.bf16.mxu0 %v2755_v10  ;;  %2408 = vmatprep.mubr.msk.bf16.mxu1 %vm2756_vm1, %v2755_v10  ;;  %s2761_s25 = smov 112   ;;  %s2762_s26 = smov 104   ;;  %v2921_v60 = vld [vmem:[%s3366_s1] sm:$0xff]  ;;  %vm573_vm4 = vcmask 1043456   ;;  %vm157_vm5 = vcmask 523264   ;;  %vm1194_vm6 = vcmask 1048064  }
   0xe   :  { %s2763_s1 = smov 64   ;;  %s2764_s10 = smov 56  }
   0xf   :  { %s2765_s11 = smov 40   ;;  %s2766_s12 = smov 48  }
  0x10   :  { %2401 = vmatpush3.bf16.msra.mxu0 %v2617_v11  ;;  %s2767_s19 = smov 32   ;;  %s2769_s28 = smov [#allocation2]  }
  0x11   :  { %2412 = vmatprep.subr.bf16.mxu0 %v2755_v10  ;;  %s2235_s29 = sshll.u32 %s2769_s28, 4  ;;  %s2236_s29 = int_to_ptr.vmem [resolvable:$true] %s2235_s29 }
  0x12   :  { %p2735_p1 = scmp.lt.s32.totalorder %s2236_s29, %s2236_s29 }
  0x1d   :  { %79 = vrot.lane.b32.xlu0 %v2845_v8, %s2754_s14 }
  0x90   :  { %v43_v12 = vpop.xlane.xlu0 %42 }
  0x91   :  { %v48_v13 = vmul.f32 0.03125, %v43_v12 }
  0x92   :  { %v54_v14 = vpop.xlane.xlu1 %53 }
  0x93   :  { %v60_v15 = vmul.f32 %v48_v13, %v48_v13  ;;  %v58_v16 = vmul.f32 0.03125, %v54_v14  ;;  %v64_v26 = vsub.f32 %v2825_v0, %v48_v13 }
  0x94   :  { %v46_v17 = vpop.xlane.xlu0 %45 }
  0x95   :  { %v62_v18 = vsub.f32 %v58_v16, %v60_v15  ;;  %v49_v19 = vmul.f32 0.03125, %v46_v17 }
  0x96   :  { %v57_v20 = vpop.xlane.xlu1 %56 }
  0x97   :  { %v66_v21 = vadd.f32 1e-05, %v62_v18  ;;  %v61_v22 = vmul.f32 %v49_v19, %v49_v19  ;;  %v59_v23 = vmul.f32 0.03125, %v57_v20  ;;  %v65_v29 = vsub.f32 %v2830_v1, %v49_v19 }
  0x98   :  { %v80_v33 = vpop.permute.xlu0 %79 }
  0x99   :  { %2638 = vrsqrt.f32 %v66_v21  ;;  %v63_v24 = vsub.f32 %v59_v23, %v61_v22 }
  0x9b   :  { %v67_v25 = vadd.f32 1e-05, %v63_v24 }
  0x9d   :  { %2640 = vrsqrt.f32 %v67_v25 }
  0xa3   :  { %v2639_v27 = vpop.eup %2638 }
  0xa4   :  { %v70_v28 = vmul.f32 %v2639_v27, %v64_v26 }
  0xa6   :  { %v76_v32 = vmul.f32 %v2845_v8, %v70_v28 }
  0xa7   :  { %v2641_v30 = vpop.eup %2640 }
  0xa8   :  { %v71_v31 = vmul.f32 %v2641_v30, %v65_v29  ;;  %v82_v35 = vadd.f32 %v80_v33, %v76_v32 }
  0xaa   :  { %v77_v34 = vmul.f32 %v2845_v8, %v71_v31 }
  0xac   :  { %v83_v36 = vadd.f32 %v80_v33, %v77_v34 }
  0xae   :  { %v84_v37 = vpack.c.bf16 %v83_v36, %v82_v35 }
  0xb0   :  { %2403 = vmatmul.mubr.msk.bf16.vlgmr.msra.gmra.mrb[0].mxu0 %vm40_vm0, %v84_v37 }
  0xb1   :  { %2414 = vmatprep.mubr.msk.bf16.mxu0 %vm2756_vm1, %v2755_v10 }
 0x183   :  { %v142_v39 = vpop.f32.mrb[0].mxu0 }
 0x184   :  { %v2404_v40 = vpop.f32.mrb[1].mxu0  ;;  %v2876_v42 = vadd.f32 %v2873_v38, %v142_v39 }
 0x185   :  { %v145_v41 = vpop.f32.mrb[2].mxu0 }
 0x186   :  { %v2879_v43 = vadd.f32 %v2873_v38, %v145_v41  ;;  %v2405_v44 = vpop.f32.mrb[3].mxu0  ;;  %v160_v47 = vmul.f32 0.35355338, %v2876_v42 }
 0x188   :  { %v161_v45 = vmul.f32 0.35355338, %v2879_v43  ;;  %v2884_v46 = vpack.c.bf16 %v2879_v43, %v2876_v42 }
 0x18a   :  { %269 = vrot.lane.b32.xlu0 %v2884_v46, %s2757_s21  ;;  %218 = vrot.lane.b32.xlu1 %v2884_v46, %s2758_s22  ;;  %v162_v48 = vpack.c.bf16 %v161_v45, %v160_v47 }
 0x18e   :  { %320 = vrot.lane.b32.xlu0 %v2884_v46, %s2759_s23  ;;  %216 = vrot.lane.b32.xlu1 %v162_v48, %s2760_s24 }
 0x192   :  { %165 = vrot.lane.b32.xlu1 %v2884_v46, %s2754_s14 }
 0x196   :  { %267 = vrot.lane.b32.xlu1 %v162_v48, %s2761_s25 }
 0x19a   :  { %318 = vrot.lane.b32.xlu1 %v162_v48, %s2762_s26 }
 0x1fc   :  { %v270_v49 = vpop.permute.xlu0 %269  ;;  %v219_v50 = vpop.permute.xlu1 %218 }
 0x1fd   :  { %v224_v51 = vsel %vm167_vm2, %v219_v50, 0  ;;  %v275_v59 = vsel %vm167_vm2, %v270_v49, 0 }
 0x1fe   :  { %2413 = vmatpush3.bf16.xpose.msra.mxu0 %v224_v51 }
 0x1ff   :  { %2424 = vmatprep.subr.bf16.mxu0 %v2755_v10 }
 0x200   :  { %v217_v52 = vpop.permute.xlu1 %216  ;;  %v321_v53 = vpop.permute.xlu0 %320 }
 0x201   :  { %v326_v55 = vsel %vm167_vm2, %v321_v53, 0 }
 0x204   :  { %v166_v54 = vpop.permute.xlu1 %165 }
 0x205   :  { %2415 = vmatmul.mubr.msk.bf16.vlgmr.msra.gmra.mrb[4].mxu0 %vm167_vm2, %v217_v52  ;;  %v172_v56 = vsel %vm167_vm2, %v166_v54, 0 }
 0x206   :  { %2407 = vmatpush3.bf16.xpose.msra.mxu1 %v172_v56  ;;  %2425 = vmatpush3.bf16.xpose.msra.mxu0 %v326_v55 }
 0x207   :  { %2426 = vmatprep.mubr.msk.bf16.mxu0 %vm2756_vm1, %v2755_v10  ;;  %2418 = vmatprep.subr.bf16.mxu1 %v2755_v10 }
 0x208   :  { %v268_v57 = vpop.permute.xlu1 %267  ;;  %2436 = vmatprep.subr.bf16.mxu0 %v2755_v10 }
 0x20c   :  { %v319_v58 = vpop.permute.xlu1 %318 }
 0x20d   :  { %2409 = vmatmul.mubr.msk.bf16.vlgmr.msra.gmra.mrb[0].mxu1 %vm167_vm2, %v162_v48  ;;  %2427 = vmatmul.mubr.msk.bf16.vlgmr.msra.gmra.mrb[8].mxu0 %vm167_vm2, %v319_v58 }
 0x20e   :  { %2419 = vmatpush3.bf16.xpose.msra.mxu1 %v275_v59  ;;  %2420 = vmatprep.mubr.msk.bf16.mxu1 %vm2756_vm1, %v2755_v10 }
 0x20f   :  { %2430 = vmatprep.subr.bf16.mxu1 %v2755_v10  ;;  %2438 = vmatprep.mubr.msk.bf16.mxu0 %vm2756_vm1, %v2755_v10 }
 0x215   :  { %2421 = vmatmul.mubr.msk.bf16.vlgmr.msra.gmra.mrb[4].mxu1 %vm167_vm2, %v268_v57 }
 0x216   :  { %2432 = vmatprep.mubr.msk.bf16.mxu1 %vm2756_vm1, %v2755_v10 }
 0x2d8   :  { %v260_v61 = vpop.f32.mrb[4].mxu0 }
 0x2d9   :  { %v371_v63 = vadd.f32 %v260_v61, %v2921_v60  ;;  %v2416_v2 = vpop.f32.mrb[5].mxu0 }
 0x2da   :  { %v263_v3 = vpop.f32.mrb[6].mxu0 }
 0x2db   :  { %v372_v4 = vadd.f32 %v263_v3, %v2926_v62  ;;  %v2417_v5 = vpop.f32.mrb[7].mxu0  ;;  %v384_v6 = vsel %vm377_vm3, %v371_v63, -inf }
 0x2dc   :  { %385 = vmax.xlane.f32.xlu0 %v384_v6 }
 0x2dd   :  { %v387_v7 = vsel %vm377_vm3, %v372_v4, -inf }
 0x2de   :  { %388 = vmax.xlane.f32.xlu1 %v387_v7 }
 0x2e0   :  { %v208_v9 = vpop.f32.mrb[0].mxu1  ;;  %v362_v11 = vpop.f32.mrb[8].mxu0 }
 0x2e1   :  { %v2933_v12 = vadd.f32 %v208_v9, %v2921_v60  ;;  %v2410_v13 = vpop.f32.mrb[1].mxu1  ;;  %v2428_v14 = vpop.f32.mrb[9].mxu0  ;;  %v375_v29 = vadd.f32 %v362_v11, %v2921_v60 }
 0x2e2   :  { %v211_v15 = vpop.f32.mrb[2].mxu1  ;;  %v365_v16 = vpop.f32.mrb[10].mxu0 }
 0x2e3   :  { %v370_v17 = vadd.f32 %v211_v15, %v2926_v62  ;;  %v2411_v18 = vpop.f32.mrb[3].mxu1  ;;  %v2429_v19 = vpop.f32.mrb[11].mxu0  ;;  %v378_v20 = vsel %vm377_vm3, %v2933_v12, -inf  ;;  %v376_v31 = vadd.f32 %v365_v16, %v2926_v62  ;;  %v396_v32 = vsel %vm377_vm3, %v375_v29, -inf }
 0x2e4   :  { %379 = vmax.xlane.f32.xlu1 %v378_v20 }
 0x2e5   :  { %v381_v21 = vsel %vm377_vm3, %v370_v17, -inf  ;;  %v399_v33 = vsel %vm377_vm3, %v376_v31, -inf }
 0x2e8   :  { %v311_v22 = vpop.f32.mrb[4].mxu1  ;;  %382 = vmax.xlane.f32.xlu1 %v381_v21 }
 0x2e9   :  { %v373_v23 = vadd.f32 %v311_v22, %v2921_v60  ;;  %v2422_v24 = vpop.f32.mrb[5].mxu1 }
 0x2ea   :  { %v314_v25 = vpop.f32.mrb[6].mxu1 }
 0x2eb   :  { %v374_v26 = vadd.f32 %v314_v25, %v2926_v62  ;;  %v2423_v27 = vpop.f32.mrb[7].mxu1  ;;  %v390_v28 = vsel %vm377_vm3, %v373_v23, -inf }
 0x2ec   :  { %391 = vmax.xlane.f32.xlu1 %v390_v28 }
 0x2ed   :  { %v393_v30 = vsel %vm377_vm3, %v374_v26, -inf }
 0x2f0   :  { %394 = vmax.xlane.f32.xlu1 %v393_v30 }
 0x2f4   :  { %397 = vmax.xlane.f32.xlu1 %v396_v32  ;;  %v471_v32 = vld [vmem:[%s3368_s3 + $0x4] sm:$0xf] }
 0x2f8   :  { %400 = vmax.xlane.f32.xlu1 %v399_v33 }
 0x309   :  { %474 = vrot.lane.b32.xlu1 %v2884_v46, %s2763_s1 }
 0x369   :  { %v386_v34 = vpop.xlane.xlu0 %385 }
 0x36a   :  { %v404_v35 = vsub.f32 %v371_v63, %v386_v34 }
 0x36b   :  { %v389_v36 = vpop.xlane.xlu1 %388 }
 0x36c   :  { %v414_v37 = vmul.f32 1.442695, %v404_v35  ;;  %v405_v39 = vsub.f32 %v372_v4, %v389_v36  ;;  %v575_v36 = vsel %vm573_vm4, %v471_v32, 0 }
 0x36e   :  { %2642 = vpow2.f32 %v414_v37  ;;  %v416_v40 = vmul.f32 1.442695, %v405_v39  ;;  %v470_v37 = vld [vmem:[%s3368_s3] sm:$0xf] }
 0x36f   :  { %v622_v39 = vsel %vm573_vm4, %v470_v37, 0 }
 0x370   :  { %2644 = vpow2.f32 %v416_v40 }
 0x371   :  { %v380_v41 = vpop.xlane.xlu1 %379 }
 0x372   :  { %v402_v18 = vsub.f32 %v2933_v12, %v380_v41 }
 0x374   :  { %v410_v19 = vmul.f32 1.442695, %v402_v18 }
 0x375   :  { %v383_v44 = vpop.xlane.xlu1 %382 }
 0x376   :  { %v403_v45 = vsub.f32 %v370_v17, %v383_v44 }
 0x378   :  { %v2949_v47 = vpop.eup %2642  ;;  %v412_v48 = vmul.f32 1.442695, %v403_v45 }
 0x379   :  { %v392_v49 = vpop.xlane.xlu1 %391  ;;  %v432_v50 = vsel %vm377_vm3, %v2949_v47, 0.0 }
 0x37a   :  { %v2645_v51 = vpop.eup %2644  ;;  %2646 = vpow2.f32 %v412_v48  ;;  %v406_v52 = vsub.f32 %v373_v23, %v392_v49  ;;  %433 = vadd.xlane.f32.xlu0 %v432_v50 }
 0x37b   :  { %v435_v55 = vsel %vm377_vm3, %v2645_v51, 0.0 }
 0x37c   :  { %v418_v53 = vmul.f32 1.442695, %v406_v52 }
 0x37d   :  { %v395_v54 = vpop.xlane.xlu1 %394 }
 0x37e   :  { %2648 = vpow2.f32 %v418_v53  ;;  %436 = vadd.xlane.f32.xlu0 %v435_v55  ;;  %v407_v56 = vsub.f32 %v374_v26, %v395_v54 }
 0x380   :  { %v420_v61 = vmul.f32 1.442695, %v407_v56 }
 0x381   :  { %v398_v57 = vpop.xlane.xlu1 %397 }
 0x382   :  { %v408_v58 = vsub.f32 %v375_v29, %v398_v57 }
 0x384   :  { %v2647_v59 = vpop.eup %2646  ;;  %v422_v63 = vmul.f32 1.442695, %v408_v58 }
 0x385   :  { %v401_v2 = vpop.xlane.xlu1 %400  ;;  %v429_v3 = vsel %vm377_vm3, %v2647_v59, 0.0 }
 0x386   :  { %2650 = vpow2.f32 %v422_v63  ;;  %v409_v4 = vsub.f32 %v376_v31, %v401_v2  ;;  %430 = vadd.xlane.f32.xlu1 %v429_v3 }
 0x387   :  { %2652 = vpow2.f32 %v420_v61 }
 0x388   :  { %v2955_v5 = vpop.eup %2648  ;;  %v424_v6 = vmul.f32 1.442695, %v409_v4 }
 0x389   :  { %v475_v7 = vpop.permute.xlu1 %474  ;;  %v438_v9 = vsel %vm377_vm3, %v2955_v5, 0.0 }
 0x38a   :  { %439 = vadd.xlane.f32.xlu1 %v438_v9  ;;  %2431 = vmatpush3.bf16.msra.mxu1 %v475_v7  ;;  %2654 = vpow2.f32 %v424_v6 }
 0x38b   :  { %2442 = vmatprep.subr.bf16.mxu1 %v2755_v10  ;;  %2656 = vpow2.f32 %v410_v19  ;;  %v473_v19 = vld [vmem:[%s3368_s3 + $0xc] sm:$0xf] }
 0x390   :  { %v2960_v11 = vpop.eup %2650 }
 0x391   :  { %v444_v13 = vsel %vm377_vm3, %v2960_v11, 0.0  ;;  %v2964_v14 = vpop.eup %2652 }
 0x392   :  { %445 = vadd.xlane.f32.xlu1 %v444_v13  ;;  %v441_v15 = vsel %vm377_vm3, %v2964_v14, 0.0 }
 0x394   :  { %522 = vrot.lane.b32.xlu0 %v2884_v46, %s2764_s10  ;;  %v2970_v16 = vpop.eup %2654 }
 0x395   :  { %v447_v17 = vsel %vm377_vm3, %v2970_v16, 0.0  ;;  %v2657_v20 = vpop.eup %2656 }
 0x396   :  { %442 = vadd.xlane.f32.xlu1 %v441_v15  ;;  %v426_v21 = vsel %vm377_vm3, %v2657_v20, 0.0 }
 0x39a   :  { %448 = vadd.xlane.f32.xlu1 %v447_v17 }
 0x3ab   :  { %762 = vrot.lane.b32.xlu1 %v2884_v46, %s2765_s11 }
 0x3af   :  { %862 = vrot.lane.b32.xlu1 %v2873_v38, %s2767_s19 }
 0x3b3   :  { %427 = vadd.xlane.f32.xlu0 %v426_v21 }
 0x3c9   :  { %665 = vrot.lane.b32.xlu0 %v2884_v46, %s2766_s12 }
 0x407   :  { %v434_v22 = vpop.xlane.xlu0 %433 }
 0x408   :  { %2658 = vrcp.f32 %v434_v22 }
 0x40b   :  { %v437_v23 = vpop.xlane.xlu0 %436 }
 0x40c   :  { %2660 = vrcp.f32 %v437_v23 }
 0x40f   :  { %v523_v24 = vpop.permute.xlu0 %522 }
 0x410   :  { %2437 = vmatpush3.bf16.msra.mxu0 %v523_v24  ;;  %v814_v24 = vsel %vm573_vm4, %v473_v19, 0 }
 0x411   :  { %2448 = vmatprep.subr.bf16.mxu0 %v2755_v10 }
 0x412   :  { %v2659_v12 = vpop.eup %2658 }
 0x413   :  { %v460_v26 = vmul.f32 %v2659_v12, %v2949_v47  ;;  %v431_v46 = vpop.xlane.xlu1 %430 }
 0x414   :  { %2662 = vrcp.f32 %v431_v46 }
 0x416   :  { %v2661_v25 = vpop.eup %2660 }
 0x417   :  { %v461_v27 = vmul.f32 %v2661_v25, %v2645_v51  ;;  %v440_v40 = vpop.xlane.xlu1 %439 }
 0x419   :  { %v467_v28 = vpack.c.bf16 %v461_v27, %v460_v26 }
 0x41b   :  { %2439 = vmatmul.mubr.msk.bf16.vlgmr.msra.gmra.mrb[12].mxu0 %vm377_vm3, %v467_v28 }
 0x41c   :  { %2450 = vmatprep.mubr.msk.bf16.mxu0 %vm2756_vm1, %v2755_v10  ;;  %2449 = vmatpush3.bf16.msra.mxu0 %v622_v39 }
 0x41d   :  { %2460 = vmatprep.subr.bf16.mxu0 %v2755_v10 }
 0x41e   :  { %v2663_v30 = vpop.eup %2662 }
 0x41f   :  { %v459_v33 = vmul.f32 %v2663_v30, %v2647_v59  ;;  %v446_v41 = vpop.xlane.xlu1 %445 }
 0x423   :  { %v443_v44 = vpop.xlane.xlu1 %442 }
 0x427   :  { %v449_v45 = vpop.xlane.xlu1 %448 }
 0x42b   :  { %v763_v59 = vpop.permute.xlu1 %762 }
 0x440   :  { %v428_v29 = vpop.xlane.xlu0 %427 }
 0x441   :  { %2664 = vrcp.f32 %v428_v29 }
 0x442   :  { %2666 = vrcp.f32 %v443_v44 }
 0x443   :  { %2668 = vrcp.f32 %v440_v40 }
 0x444   :  { %2670 = vrcp.f32 %v449_v45  ;;  %v666_v53 = vpop.permute.xlu0 %665 }
 0x445   :  { %2672 = vrcp.f32 %v446_v41 }
 0x44b   :  { %v2665_v31 = vpop.eup %2664 }
 0x44c   :  { %v458_v34 = vmul.f32 %v2665_v31, %v2657_v20  ;;  %v2667_v52 = vpop.eup %2666 }
 0x44d   :  { %v2669_v54 = vpop.eup %2668  ;;  %v463_v55 = vmul.f32 %v2667_v52, %v2964_v14 }
 0x44e   :  { %v466_v35 = vpack.c.bf16 %v459_v33, %v458_v34  ;;  %v462_v56 = vmul.f32 %v2669_v54, %v2955_v5  ;;  %v2671_v58 = vpop.eup %2670 }
 0x44f   :  { %v2673_v61 = vpop.eup %2672  ;;  %v465_v63 = vmul.f32 %v2671_v58, %v2970_v16  ;;  %v2618_v58 = vld [vmem:[%s3369_s4] sm:$0xff]  }
 0x450   :  { %2433 = vmatmul.mubr.msk.bf16.vlgmr.msra.gmra.mrb[8].mxu1 %vm377_vm3, %v466_v35  ;;  %v468_v57 = vpack.c.bf16 %v463_v55, %v462_v56  ;;  %v464_v2 = vmul.f32 %v2673_v61, %v2960_v11  ;;  %v472_v11 = vld [vmem:[%s3368_s3 + $0x8] sm:$0xf]  ;;  %v2267_v61 = vld [vmem:[%s3372_s7 + $0x1] ss:$0 sm:$0xff] }
 0x451   :  { %2443 = vmatpush3.bf16.msra.mxu1 %v575_v36  ;;  %2444 = vmatprep.mubr.msk.bf16.mxu1 %vm2756_vm1, %v2755_v10  ;;  %v717_v13 = vsel %vm573_vm4, %v472_v11, 0 }
 0x452   :  { %2454 = vmatprep.subr.bf16.mxu1 %v2755_v10  ;;  %v469_v3 = vpack.c.bf16 %v465_v63, %v464_v2 }
 0x4ee   :  { %v562_v47 = vpop.f32.mrb[12].mxu0 }
 0x4ef   :  { %v2440_v48 = vpop.f32.mrb[13].mxu0 }
 0x4f0   :  { %v565_v49 = vpop.f32.mrb[14].mxu0 }
 0x4f1   :  { %v569_v50 = vpack.c.bf16 %v565_v49, %v562_v47  ;;  %v2441_v51 = vpop.f32.mrb[15].mxu0  ;;  %v863_v47 = vpop.permute.xlu1 %862 }
 0x4f3   :  { %2445 = vmatmul.mubr.msk.bf16.vlgmr.msra.gmra.mrb[12].mxu1 %vm167_vm2, %v569_v50 }
 0x4f4   :  { %2455 = vmatpush3.bf16.msra.mxu1 %v666_v53  ;;  %2456 = vmatprep.mubr.msk.bf16.mxu1 %vm2756_vm1, %v2755_v10 }
 0x4f5   :  { %2466 = vmatprep.subr.bf16.mxu1 %v2755_v10 }
 0x4fb   :  { %2457 = vmatmul.mubr.msk.bf16.vlgmr.msra.gmra.mrb[16].mxu1 %vm377_vm3, %v468_v57 }
 0x4fc   :  { %2467 = vmatpush3.bf16.msra.mxu1 %v763_v59  ;;  %2468 = vmatprep.mubr.msk.bf16.mxu1 %vm2756_vm1, %v2755_v10  ;;  %v2619_v59 = vld [vmem:[%s3369_s4 + $0x8] sm:$0xff]  }
 0x4fd   :  { %2478 = vmatprep.subr.bf16.mxu1 %v2755_v10 }
 0x503   :  { %2469 = vmatmul.mubr.msk.bf16.vlgmr.msra.gmra.mrb[20].mxu1 %vm377_vm3, %v469_v3 }
 0x504   :  { %2482 = vmatprep.mubr.msk.bf16.mxu1 %vm2756_vm1, %v2755_v10  ;;  %2479 = vmatpush3.bf16.msra.mxu1 %v2618_v58 }
 0x505   :  { %2480 = vmatprep.subr.bf16.mxu1 %v2755_v10 }
 0x508   :  { %2481 = vmatpush3.bf16.msra.mxu1 %v2619_v59 }
 0x509   :  { %2498 = vmatprep.subr.bf16.mxu1 %v2755_v10 }
 0x523   :  { %v514_v4 = vpop.f32.mrb[8].mxu1 }
 0x524   :  { %v2434_v5 = vpop.f32.mrb[9].mxu1 }
 0x525   :  { %v517_v6 = vpop.f32.mrb[10].mxu1 }
 0x526   :  { %v521_v7 = vpack.c.bf16 %v517_v6, %v514_v4  ;;  %v2435_v9 = vpop.f32.mrb[11].mxu1 }
 0x528   :  { %2451 = vmatmul.mubr.msk.bf16.vlgmr.msra.gmra.mrb[16].mxu0 %vm167_vm2, %v521_v7 }
 0x529   :  { %2462 = vmatprep.mubr.msk.bf16.mxu0 %vm2756_vm1, %v2755_v10  ;;  %2461 = vmatpush3.bf16.msra.mxu0 %v717_v13 }
 0x52a   :  { %2472 = vmatprep.subr.bf16.mxu0 %v2755_v10 }
 0x5c6   :  { %v611_v14 = vpop.f32.mrb[12].mxu1 }
 0x5c7   :  { %v2446_v15 = vpop.f32.mrb[13].mxu1 }
 0x5c8   :  { %v614_v16 = vpop.f32.mrb[14].mxu1 }
 0x5c9   :  { %v2447_v17 = vpop.f32.mrb[15].mxu1 }
 0x5ce   :  { %v705_v18 = vpop.f32.mrb[16].mxu1 }
 0x5cf   :  { %v2458_v20 = vpop.f32.mrb[17].mxu1 }
 0x5d0   :  { %v708_v21 = vpop.f32.mrb[18].mxu1 }
 0x5d1   :  { %v712_v22 = vpack.c.bf16 %v708_v21, %v705_v18  ;;  %v2459_v23 = vpop.f32.mrb[19].mxu1 }
 0x5d3   :  { %2463 = vmatmul.mubr.msk.bf16.vlgmr.msra.gmra.mrb[20].mxu0 %vm167_vm2, %v712_v22 }
 0x5d4   :  { %2473 = vmatpush3.bf16.msra.mxu0 %v814_v24  ;;  %2474 = vmatprep.mubr.msk.bf16.mxu0 %vm2756_vm1, %v2755_v10 }
 0x5d5   :  { %2486 = vmatprep.subr.bf16.mxu0 %v2755_v10 }
 0x5d6   :  { %v802_v38 = vpop.f32.mrb[20].mxu1 }
 0x5d7   :  { %v2470_v12 = vpop.f32.mrb[21].mxu1 }
 0x5d8   :  { %v805_v25 = vpop.f32.mrb[22].mxu1 }
 0x5d9   :  { %v809_v26 = vpack.c.bf16 %v805_v25, %v802_v38  ;;  %v2471_v27 = vpop.f32.mrb[23].mxu1 }
 0x5db   :  { %2475 = vmatmul.mubr.msk.bf16.vlgmr.msra.gmra.mrb[24].mxu0 %vm167_vm2, %v809_v26 }
 0x5dc   :  { %2494 = vmatprep.mubr.msk.bf16.mxu0 %vm2756_vm1, %v2755_v10 }
 0x5fb   :  { %v658_v28 = vpop.f32.mrb[16].mxu0 }
 0x5fc   :  { %v659_v46 = vadd.f32 %v658_v28, %v611_v14  ;;  %v2452_v29 = vpop.f32.mrb[17].mxu0  ;;  %v2620_v28 = vld [vmem:[%s3370_s5] sm:$0xff]  }
 0x5fd   :  { %v661_v30 = vpop.f32.mrb[18].mxu0  ;;  %2487 = vmatpush3.bf16.msra.mxu0 %v2620_v28  ;;  %v2622_v29 = vld [vmem:[%s3370_s5 + $0x10] sm:$0xff]  }
 0x5fe   :  { %v662_v31 = vadd.f32 %v661_v30, %v614_v16  ;;  %v2453_v32 = vpop.f32.mrb[19].mxu0  ;;  %2488 = vmatprep.subr.bf16.mxu0 %v2755_v10  ;;  %v2623_v30 = vld [vmem:[%s3370_s5 + $0x18] sm:$0xff]  }
 0x6a6   :  { %v753_v33 = vpop.f32.mrb[20].mxu0 }
 0x6a7   :  { %v760_v34 = vadd.f32 %v753_v33, %v659_v46  ;;  %v2464_v35 = vpop.f32.mrb[21].mxu0  ;;  %v2621_v46 = vld [vmem:[%s3370_s5 + $0x8] sm:$0xff]  }
 0x6a8   :  { %v756_v36 = vpop.f32.mrb[22].mxu0  ;;  %2489 = vmatpush3.bf16.msra.mxu0 %v2621_v46 }
 0x6a9   :  { %v761_v37 = vadd.f32 %v756_v36, %v662_v31  ;;  %v2465_v39 = vpop.f32.mrb[23].mxu0  ;;  %2490 = vmatprep.subr.bf16.mxu0 %v2755_v10 }
 0x6ac   :  { %2491 = vmatpush3.bf16.msra.mxu0 %v2622_v29 }
 0x6ad   :  { %2492 = vmatprep.subr.bf16.mxu0 %v2755_v10 }
 0x6ae   :  { %v850_v40 = vpop.f32.mrb[24].mxu0 }
 0x6af   :  { %v857_v41 = vadd.f32 %v850_v40, %v760_v34  ;;  %v2476_v44 = vpop.f32.mrb[25].mxu0 }
 0x6b0   :  { %v853_v45 = vpop.f32.mrb[26].mxu0  ;;  %2493 = vmatpush3.bf16.msra.mxu0 %v2623_v30 }
 0x6b1   :  { %v859_v48 = vadd.f32 %v857_v41, %v2825_v0  ;;  %v858_v49 = vadd.f32 %v853_v45, %v761_v37  ;;  %v2477_v50 = vpop.f32.mrb[27].mxu0  ;;  %2512 = vmatprep.subr.bf16.mxu0 %v2755_v10 }
 0x6b3   :  { %v860_v51 = vadd.f32 %v858_v49, %v2830_v1  ;;  %v3036_v52 = vadd.f32 %v863_v47, %v859_v48 }
 0x6b5   :  { %v3038_v53 = vadd.f32 %v863_v47, %v860_v51  ;;  %v867_v54 = vsel %vm40_vm0, %v3036_v52, 0.0  ;;  %v875_v55 = vmul.f32 %v3036_v52, %v3036_v52 }
 0x6b6   :  { %868 = vadd.xlane.f32.xlu1 %v867_v54 }
 0x6b7   :  { %v870_v56 = vsel %vm40_vm0, %v3038_v53, 0.0  ;;  %v876_v0 = vmul.f32 %v3038_v53, %v3038_v53  ;;  %v877_v1 = vsel %vm40_vm0, %v875_v55, 0.0 }
 0x6b8   :  { %871 = vadd.xlane.f32.xlu0 %v870_v56 }
 0x6b9   :  { %v880_v57 = vsel %vm40_vm0, %v876_v0, 0.0 }
 0x6ba   :  { %878 = vadd.xlane.f32.xlu1 %v877_v1 }
 0x6bc   :  { %881 = vadd.xlane.f32.xlu0 %v880_v57 }
 0x6cb   :  { %897 = vrot.lane.b32.xlu1 %v2845_v8, %s2763_s1 }
 0x6cf   :  { %1070 = vrot.lane.b32.xlu1 %v2267_v61, %s2763_s1 }
 0x6d2   :  { %902 = vrot.lane.b32.xlu0 %v2845_v8, %s2767_s19 }
 0x743   :  { %v869_v8 = vpop.xlane.xlu1 %868 }
 0x744   :  { %v873_v63 = vmul.f32 0.03125, %v869_v8 }
 0x745   :  { %v872_v2 = vpop.xlane.xlu0 %871 }
 0x746   :  { %v874_v3 = vmul.f32 0.03125, %v872_v2  ;;  %v885_v5 = vmul.f32 %v873_v63, %v873_v63  ;;  %v889_v17 = vsub.f32 %v3036_v52, %v873_v63 }
 0x747   :  { %v879_v4 = vpop.xlane.xlu1 %878 }
 0x748   :  { %v883_v6 = vmul.f32 0.03125, %v879_v4  ;;  %v886_v9 = vmul.f32 %v874_v3, %v874_v3  ;;  %v890_v20 = vsub.f32 %v3038_v53, %v874_v3 }
 0x749   :  { %v882_v7 = vpop.xlane.xlu0 %881 }
 0x74a   :  { %v887_v11 = vsub.f32 %v883_v6, %v885_v5  ;;  %v884_v13 = vmul.f32 0.03125, %v882_v7 }
 0x74b   :  { %v898_v19 = vpop.permute.xlu1 %897 }
 0x74c   :  { %v891_v14 = vadd.f32 1e-05, %v887_v11  ;;  %v888_v15 = vsub.f32 %v884_v13, %v886_v9 }
 0x74d   :  { %v903_v38 = vpop.permute.xlu0 %902 }
 0x74e   :  { %2674 = vrsqrt.f32 %v891_v14  ;;  %v892_v16 = vadd.f32 1e-05, %v888_v15  ;;  %v3109_v15 = vld [vmem:[%s3372_s7 + $0x5] ss:$0 sm:$0xff] }
 0x74f   :  { %v1071_v8 = vpop.permute.xlu1 %1070 }
 0x750   :  { %2676 = vrsqrt.f32 %v892_v16  ;;  %v2624_v16 = vld [vmem:[%s3367_s2 + $0x10] sm:$0xff]  }
 0x758   :  { %v2675_v18 = vpop.eup %2674 }
 0x759   :  { %v895_v21 = vmul.f32 %v2675_v18, %v889_v17  ;;  %v2625_v17 = vld [vmem:[%s3367_s2 + $0x18] sm:$0xff]  }
 0x75a   :  { %v2677_v22 = vpop.eup %2676 }
 0x75b   :  { %v896_v23 = vmul.f32 %v2677_v22, %v890_v20  ;;  %v900_v24 = vmul.f32 %v898_v19, %v895_v21 }
 0x75d   :  { %v901_v12 = vmul.f32 %v898_v19, %v896_v23  ;;  %v905_v25 = vadd.f32 %v903_v38, %v900_v24 }
 0x75f   :  { %v906_v26 = vadd.f32 %v903_v38, %v901_v12 }
 0x761   :  { %v907_v27 = vpack.c.bf16 %v906_v26, %v905_v25 }
 0x763   :  { %2483 = vmatmul.mubr.msk.bf16.vlgmr.msra.gmra.mrb[24].mxu1 %vm40_vm0, %v907_v27 }
 0x764   :  { %2502 = vmatprep.mubr.msk.bf16.mxu1 %vm2756_vm1, %v2755_v10  ;;  %2499 = vmatpush3.bf16.msra.mxu1 %v2624_v16 }
 0x765   :  { %2500 = vmatprep.subr.bf16.mxu1 %v2755_v10 }
 0x768   :  { %2501 = vmatpush3.bf16.msra.mxu1 %v2625_v17 }
 0x769   :  { %2506 = vmatprep.subr.bf16.mxu1 %v2755_v10 }
 0x836   :  { %v965_v31 = vpop.f32.mrb[24].mxu1 }
 0x837   :  { %v966_v32 = vadd.f32 %v2267_v61, %v965_v31  ;;  %v2484_v33 = vpop.f32.mrb[25].mxu1 }
 0x838   :  { %v968_v34 = vpop.f32.mrb[26].mxu1 }
 0x839   :  { %v972_v35 = vmul.f32 %v966_v32, %v966_v32  ;;  %v969_v36 = vadd.f32 %v2267_v61, %v968_v34  ;;  %v2485_v37 = vpop.f32.mrb[27].mxu1 }
 0x83b   :  { %v974_v39 = vmul.f32 %v972_v35, %v966_v32  ;;  %v973_v40 = vmul.f32 %v969_v36, %v969_v36 }
 0x83d   :  { %v976_v41 = vmul.f32 0.044715, %v974_v39  ;;  %v975_v44 = vmul.f32 %v973_v40, %v969_v36 }
 0x83f   :  { %v978_v45 = vadd.f32 %v976_v41, %v966_v32  ;;  %v977_v47 = vmul.f32 0.044715, %v975_v44  ;;  %v3131_v44 = vld [vmem:[%s3372_s7 + $0x3] ss:$0 sm:$0xff] }
 0x841   :  { %v980_v48 = vmul.f32 0.7978846, %v978_v45  ;;  %v979_v49 = vadd.f32 %v977_v47, %v969_v36 }
 0x843   :  { %2678 = vtanh.f32 %v980_v48  ;;  %v981_v50 = vmul.f32 0.7978846, %v979_v49 }
 0x845   :  { %2680 = vtanh.f32 %v981_v50 }
 0x84d   :  { %v2679_v51 = vpop.eup %2678 }
 0x84e   :  { %v984_v54 = vadd.f32 1.0, %v2679_v51 }
 0x84f   :  { %v2681_v55 = vpop.eup %2680 }
 0x850   :  { %v986_v56 = vmul.f32 0.5, %v984_v54  ;;  %v985_v0 = vadd.f32 1.0, %v2681_v55 }
 0x852   :  { %v987_v1 = vmul.f32 0.5, %v985_v0  ;;  %v988_v57 = vmul.f32 %v986_v56, %v966_v32 }
 0x854   :  { %v989_v58 = vmul.f32 %v987_v1, %v969_v36 }
 0x856   :  { %v990_v59 = vpack.c.bf16 %v989_v58, %v988_v57 }
 0x858   :  { %2495 = vmatmul.mubr.msk.bf16.vlgmr.msra.gmra.mrb[28].mxu0 %vm157_vm5, %v990_v59 }
 0x859   :  { %2514 = vmatprep.mubr.msk.bf16.mxu0 %vm2756_vm1, %v2755_v10 }
 0x92b   :  { %v1060_v61 = vpop.f32.mrb[28].mxu0 }
 0x92c   :  { %v1067_v63 = vadd.f32 %v1060_v61, %v3036_v52  ;;  %v2496_v2 = vpop.f32.mrb[29].mxu0 }
 0x92d   :  { %v1063_v3 = vpop.f32.mrb[30].mxu0 }
 0x92e   :  { %v3091_v4 = vadd.f32 %v1071_v8, %v1067_v63  ;;  %v1068_v5 = vadd.f32 %v1063_v3, %v3038_v53  ;;  %v2497_v6 = vpop.f32.mrb[31].mxu0 }
 0x930   :  { %v3094_v7 = vadd.f32 %v1071_v8, %v1068_v5  ;;  %v1078_v9 = vsel %vm40_vm0, %v3091_v4, 0.0  ;;  %v1086_v52 = vmul.f32 %v3091_v4, %v3091_v4 }
 0x931   :  { %1079 = vadd.xlane.f32.xlu1 %v1078_v9 }
 0x932   :  { %v1081_v11 = vsel %vm40_vm0, %v3094_v7, 0.0  ;;  %v1087_v13 = vmul.f32 %v3094_v7, %v3094_v7  ;;  %v1088_v53 = vsel %vm40_vm0, %v1086_v52, 0.0 }
 0x933   :  { %1082 = vadd.xlane.f32.xlu0 %v1081_v11 }
 0x934   :  { %v1091_v14 = vsel %vm40_vm0, %v1087_v13, 0.0 }
 0x935   :  { %1092 = vadd.xlane.f32.xlu1 %v1091_v14 }
 0x937   :  { %1089 = vadd.xlane.f32.xlu0 %v1088_v53 }
 0x94d   :  { %1115 = vrot.lane.b32.xlu0 %v3109_v15, %s2754_s14 }
 0x9be   :  { %v1080_v18 = vpop.xlane.xlu1 %1079 }
 0x9bf   :  { %v1084_v20 = vmul.f32 0.03125, %v1080_v18 }
 0x9c0   :  { %v1083_v19 = vpop.xlane.xlu0 %1082 }
 0x9c1   :  { %v1085_v21 = vmul.f32 0.03125, %v1083_v19  ;;  %v1096_v12 = vmul.f32 %v1084_v20, %v1084_v20  ;;  %v1100_v31 = vsub.f32 %v3091_v4, %v1084_v20 }
 0x9c2   :  { %v1093_v22 = vpop.xlane.xlu1 %1092 }
 0x9c3   :  { %v1097_v23 = vmul.f32 %v1085_v21, %v1085_v21  ;;  %v1095_v24 = vmul.f32 0.03125, %v1093_v22  ;;  %v1101_v29 = vsub.f32 %v3094_v7, %v1085_v21 }
 0x9c4   :  { %v1090_v38 = vpop.xlane.xlu0 %1089 }
 0x9c5   :  { %v1099_v25 = vsub.f32 %v1095_v24, %v1097_v23  ;;  %v1094_v26 = vmul.f32 0.03125, %v1090_v38 }
 0x9c7   :  { %v1103_v27 = vadd.f32 1e-05, %v1099_v25  ;;  %v1098_v28 = vsub.f32 %v1094_v26, %v1096_v12 }
 0x9c8   :  { %v1116_v36 = vpop.permute.xlu0 %1115 }
 0x9c9   :  { %2682 = vrsqrt.f32 %v1103_v27  ;;  %v1102_v46 = vadd.f32 1e-05, %v1098_v28 }
 0x9cb   :  { %2684 = vrsqrt.f32 %v1102_v46 }
 0x9d3   :  { %v2683_v30 = vpop.eup %2682 }
 0x9d4   :  { %v1107_v32 = vmul.f32 %v2683_v30, %v1101_v29 }
 0x9d5   :  { %v2685_v33 = vpop.eup %2684 }
 0x9d6   :  { %v1106_v34 = vmul.f32 %v2685_v33, %v1100_v31  ;;  %v1113_v35 = vmul.f32 %v3109_v15, %v1107_v32 }
 0x9d8   :  { %v1112_v37 = vmul.f32 %v3109_v15, %v1106_v34  ;;  %v1119_v40 = vadd.f32 %v1116_v36, %v1113_v35 }
 0x9da   :  { %v1118_v39 = vadd.f32 %v1116_v36, %v1112_v37 }
 0x9dc   :  { %v1120_v41 = vpack.c.bf16 %v1119_v40, %v1118_v39 }
 0x9de   :  { %2503 = vmatmul.mubr.msk.bf16.vlgmr.msra.gmra.mrb[28].mxu1 %vm40_vm0, %v1120_v41 }
 0x9df   :  { %2508 = vmatprep.mubr.msk.bf16.mxu1 %vm2756_vm1, %v2755_v10 }
 0xab1   :  { %v1179_v45 = vpop.f32.mrb[28].mxu1 }
 0xab2   :  { %v2504_v47 = vpop.f32.mrb[29].mxu1  ;;  %v3134_v49 = vadd.f32 %v3131_v44, %v1179_v45 }
 0xab3   :  { %v1182_v48 = vpop.f32.mrb[30].mxu1 }
 0xab4   :  { %v3137_v50 = vadd.f32 %v3131_v44, %v1182_v48  ;;  %v2505_v51 = vpop.f32.mrb[31].mxu1  ;;  %v1197_v56 = vmul.f32 0.35355338, %v3134_v49 }
 0xab6   :  { %v1198_v54 = vmul.f32 0.35355338, %v3137_v50  ;;  %v3142_v55 = vpack.c.bf16 %v3137_v50, %v3134_v49 }
 0xab8   :  { %1202 = vrot.lane.b32.xlu0 %v3142_v55, %s2754_s14  ;;  %1254 = vrot.lane.b32.xlu1 %v3142_v55, %s2758_s22  ;;  %v1199_v0 = vpack.c.bf16 %v1198_v54, %v1197_v56 }
 0xabc   :  { %1303 = vrot.lane.b32.xlu0 %v1199_v0, %s2761_s25  ;;  %1252 = vrot.lane.b32.xlu1 %v1199_v0, %s2760_s24 }
 0xac0   :  { %1354 = vrot.lane.b32.xlu0 %v1199_v0, %s2762_s26  ;;  %1305 = vrot.lane.b32.xlu1 %v3142_v55, %s2757_s21 }
 0xac4   :  { %1356 = vrot.lane.b32.xlu1 %v3142_v55, %s2759_s23 }
 0xb2a   :  { %v1203_v1 = vpop.permute.xlu0 %1202  ;;  %v1255_v57 = vpop.permute.xlu1 %1254 }
 0xb2b   :  { %v1208_v58 = vsel %vm167_vm2, %v1203_v1, 0  ;;  %v1260_v59 = vsel %vm167_vm2, %v1255_v57, 0 }
 0xb2c   :  { %2507 = vmatpush3.bf16.xpose.msra.mxu1 %v1208_v58  ;;  %2513 = vmatpush3.bf16.xpose.msra.mxu0 %v1260_v59 }
 0xb2d   :  { %2518 = vmatprep.subr.bf16.mxu1 %v2755_v10  ;;  %2524 = vmatprep.subr.bf16.mxu0 %v2755_v10 }
 0xb2e   :  { %v1253_v61 = vpop.permute.xlu1 %1252  ;;  %v1304_v5 = vpop.permute.xlu0 %1303 }
 0xb32   :  { %v1306_v8 = vpop.permute.xlu1 %1305  ;;  %v1355_v6 = vpop.permute.xlu0 %1354 }
 0xb33   :  { %v1311_v63 = vsel %vm167_vm2, %v1306_v8, 0  ;;  %2509 = vmatmul.mubr.msk.bf16.vlgmr.msra.gmra.mrb[32].mxu1 %vm167_vm2, %v1199_v0  ;;  %2515 = vmatmul.mubr.msk.bf16.vlgmr.msra.gmra.mrb[32].mxu0 %vm167_vm2, %v1253_v61 }
 0xb34   :  { %2519 = vmatpush3.bf16.xpose.msra.mxu1 %v1311_v63  ;;  %2520 = vmatprep.mubr.msk.bf16.mxu1 %vm2756_vm1, %v2755_v10 }
 0xb35   :  { %2526 = vmatprep.mubr.msk.bf16.mxu0 %vm2756_vm1, %v2755_v10  ;;  %2530 = vmatprep.subr.bf16.mxu1 %v2755_v10 }
 0xb36   :  { %v1357_v2 = vpop.permute.xlu1 %1356 }
 0xb37   :  { %v1362_v3 = vsel %vm167_vm2, %v1357_v2, 0 }
 0xb38   :  { %2525 = vmatpush3.bf16.xpose.msra.mxu0 %v1362_v3 }
 0xb39   :  { %2536 = vmatprep.subr.bf16.mxu0 %v2755_v10 }
 0xb3b   :  { %2521 = vmatmul.mubr.msk.bf16.vlgmr.msra.gmra.mrb[36].mxu1 %vm167_vm2, %v1304_v5 }
 0xb3c   :  { %2532 = vmatprep.mubr.msk.bf16.mxu1 %vm2756_vm1, %v2755_v10 }
 0xb3f   :  { %2527 = vmatmul.mubr.msk.bf16.vlgmr.msra.gmra.mrb[36].mxu0 %vm167_vm2, %v1355_v6 }
 0xb40   :  { %2538 = vmatprep.mubr.msk.bf16.mxu0 %vm2756_vm1, %v2755_v10 }
 0xc06   :  { %v1244_v9 = vpop.f32.mrb[32].mxu1  ;;  %v1296_v11 = vpop.f32.mrb[32].mxu0 }
 0xc07   :  { %v1407_v13 = vadd.f32 %v1296_v11, %v2921_v60  ;;  %v2510_v52 = vpop.f32.mrb[33].mxu1  ;;  %v2516_v14 = vpop.f32.mrb[33].mxu0  ;;  %v1405_v36 = vadd.f32 %v1244_v9, %v2921_v60 }
 0xc08   :  { %v1247_v53 = vpop.f32.mrb[34].mxu1  ;;  %v1299_v16 = vpop.f32.mrb[34].mxu0 }
 0xc09   :  { %v1408_v17 = vadd.f32 %v1299_v16, %v2926_v62  ;;  %v2511_v18 = vpop.f32.mrb[35].mxu1  ;;  %v2517_v19 = vpop.f32.mrb[35].mxu0  ;;  %v1419_v20 = vsel %vm377_vm3, %v1407_v13, -inf  ;;  %v1406_v39 = vadd.f32 %v1247_v53, %v2926_v62  ;;  %v1413_v40 = vsel %vm377_vm3, %v1405_v36, -inf }
 0xc0a   :  { %1420 = vmax.xlane.f32.xlu1 %v1419_v20 }
 0xc0b   :  { %v1422_v21 = vsel %vm377_vm3, %v1408_v17, -inf  ;;  %v1416_v45 = vsel %vm377_vm3, %v1406_v39, -inf }
 0xc0c   :  { %1423 = vmax.xlane.f32.xlu0 %v1422_v21 }
 0xc0e   :  { %v1347_v22 = vpop.f32.mrb[36].mxu1 }
 0xc0f   :  { %v2522_v23 = vpop.f32.mrb[37].mxu1  ;;  %v1409_v41 = vadd.f32 %v1347_v22, %v2921_v60 }
 0xc10   :  { %v1350_v24 = vpop.f32.mrb[38].mxu1 }
 0xc11   :  { %v2523_v38 = vpop.f32.mrb[39].mxu1  ;;  %v1410_v47 = vadd.f32 %v1350_v24, %v2926_v62  ;;  %v1425_v48 = vsel %vm377_vm3, %v1409_v41, -inf }
 0xc12   :  { %v1398_v12 = vpop.f32.mrb[36].mxu0 }
 0xc13   :  { %v2528_v25 = vpop.f32.mrb[37].mxu0  ;;  %v1411_v51 = vadd.f32 %v1398_v12, %v2921_v60  ;;  %v1428_v54 = vsel %vm377_vm3, %v1410_v47, -inf }
 0xc14   :  { %v1401_v26 = vpop.f32.mrb[38].mxu0 }
 0xc15   :  { %v2529_v27 = vpop.f32.mrb[39].mxu0  ;;  %v1431_v56 = vsel %vm377_vm3, %v1411_v51, -inf  ;;  %v1412_v0 = vadd.f32 %v1401_v26, %v2926_v62 }
 0xc17   :  { %v1434_v1 = vsel %vm377_vm3, %v1412_v0, -inf }
 0xc97   :  { %v1421_v28 = vpop.xlane.xlu1 %1420 }
 0xc98   :  { %v1439_v46 = vsub.f32 %v1407_v13, %v1421_v28 }
 0xc99   :  { %v1424_v29 = vpop.xlane.xlu0 %1423 }
 0xc9a   :  { %v1449_v30 = vmul.f32 1.442695, %v1439_v46  ;;  %v1440_v31 = vsub.f32 %v1408_v17, %v1424_v29 }
 0xc9c   :  { %2686 = vpow2.f32 %v1449_v30  ;;  %v1451_v32 = vmul.f32 1.442695, %v1440_v31 }
 0xc9e   :  { %2688 = vpow2.f32 %v1451_v32 }
 0xca6   :  { %v2687_v33 = vpop.eup %2686 }
 0xca7   :  { %v1467_v34 = vsel %vm377_vm3, %v2687_v33, 0.0 }
 0xca8   :  { %v2689_v35 = vpop.eup %2688  ;;  %1468 = vadd.xlane.f32.xlu0 %v1467_v34 }
 0xca9   :  { %v1470_v37 = vsel %vm377_vm3, %v2689_v35, 0.0 }
 0xcaa   :  { %1471 = vadd.xlane.f32.xlu1 %v1470_v37 }
 0xcae   :  { %1414 = vmax.xlane.f32.xlu1 %v1413_v40 }
 0xcb2   :  { %1417 = vmax.xlane.f32.xlu1 %v1416_v45 }
 0xcb6   :  { %1426 = vmax.xlane.f32.xlu1 %v1425_v48 }
 0xcba   :  { %1429 = vmax.xlane.f32.xlu1 %v1428_v54 }
 0xcbe   :  { %1558 = vrot.lane.b32.xlu0 %v3142_v55, %s2764_s10  ;;  %1432 = vmax.xlane.f32.xlu1 %v1431_v56 }
 0xcdd   :  { %1435 = vmax.xlane.f32.xlu0 %v1434_v1 }
 0xcf3   :  { %1700 = vrot.lane.b32.xlu0 %v3142_v55, %s2766_s12 }
 0xd35   :  { %v1469_v57 = vpop.xlane.xlu0 %1468 }
 0xd36   :  { %2690 = vrcp.f32 %v1469_v57 }
 0xd37   :  { %v1472_v60 = vpop.xlane.xlu1 %1471 }
 0xd38   :  { %2692 = vrcp.f32 %v1472_v60 }
 0xd39   :  { %v1559_v58 = vpop.permute.xlu0 %1558 }
 0xd3a   :  { %2537 = vmatpush3.bf16.msra.mxu0 %v1559_v58 }
 0xd3b   :  { %v1415_v59 = vpop.xlane.xlu1 %1414  ;;  %2548 = vmatprep.subr.bf16.mxu0 %v2755_v10 }
 0xd3c   :  { %v1437_v61 = vsub.f32 %v1405_v36, %v1415_v59 }
 0xd3e   :  { %v1445_v8 = vmul.f32 1.442695, %v1437_v61 }
 0xd3f   :  { %v1418_v11 = vpop.xlane.xlu1 %1417 }
 0xd40   :  { %v2691_v63 = vpop.eup %2690  ;;  %2694 = vpow2.f32 %v1445_v8  ;;  %v1438_v14 = vsub.f32 %v1406_v39, %v1418_v11  ;;  %v2289_v11 = vld [vmem:[%s3368_s3 + $0x10] sm:$0xf] }
 0xd41   :  { %v1495_v2 = vmul.f32 %v2691_v63, %v2687_v33 }
 0xd42   :  { %v2693_v62 = vpop.eup %2692  ;;  %v1447_v53 = vmul.f32 1.442695, %v1438_v14  ;;  %v2291_v14 = vld [vmem:[%s3368_s3 + $0x18] sm:$0xf] }
 0xd43   :  { %v1496_v3 = vmul.f32 %v2693_v62, %v2689_v35  ;;  %v1427_v13 = vpop.xlane.xlu1 %1426 }
 0xd44   :  { %v1441_v16 = vsub.f32 %v1409_v41, %v1427_v13  ;;  %2696 = vpow2.f32 %v1447_v53  ;;  %v2290_v41 = vld [vmem:[%s3368_s3 + $0x14] sm:$0xf]  ;;  %v1657_v13 = vsel %vm573_vm4, %v2289_v11, 0 }
 0xd45   :  { %v1502_v5 = vpack.c.bf16 %v1496_v3, %v1495_v2  ;;  %v1610_v56 = vsel %vm573_vm4, %v2290_v41, 0 }
 0xd46   :  { %v1453_v18 = vmul.f32 1.442695, %v1441_v16 }
 0xd47   :  { %2539 = vmatmul.mubr.msk.bf16.vlgmr.msra.gmra.mrb[40].mxu0 %vm377_vm3, %v1502_v5  ;;  %v1430_v52 = vpop.xlane.xlu1 %1429 }
 0xd48   :  { %2550 = vmatprep.mubr.msk.bf16.mxu0 %vm2756_vm1, %v2755_v10  ;;  %2698 = vpow2.f32 %v1453_v18  ;;  %v1442_v20 = vsub.f32 %v1410_v47, %v1430_v52  ;;  %2549 = vmatpush3.bf16.msra.mxu0 %v1657_v13 }
 0xd49   :  { %2560 = vmatprep.subr.bf16.mxu0 %v2755_v10 }
 0xd4a   :  { %v2695_v6 = vpop.eup %2694  ;;  %v1455_v23 = vmul.f32 1.442695, %v1442_v20 }
 0xd4b   :  { %v1461_v9 = vsel %vm377_vm3, %v2695_v6, 0.0  ;;  %v1433_v17 = vpop.xlane.xlu1 %1432 }
 0xd4c   :  { %1462 = vadd.xlane.f32.xlu1 %v1461_v9  ;;  %v1443_v19 = vsub.f32 %v1411_v51, %v1433_v17 }
 0xd4e   :  { %v1457_v21 = vmul.f32 1.442695, %v1443_v19  ;;  %v2697_v38 = vpop.eup %2696  ;;  %v1752_v19 = vsel %vm573_vm4, %v2291_v14, 0 }
 0xd4f   :  { %v1464_v25 = vsel %vm377_vm3, %v2697_v38, 0.0 }
 0xd50   :  { %2700 = vpow2.f32 %v1457_v21 }
 0xd51   :  { %2702 = vpow2.f32 %v1455_v23 }
 0xd52   :  { %v2699_v26 = vpop.eup %2698 }
 0xd53   :  { %v1473_v27 = vsel %vm377_vm3, %v2699_v26, 0.0 }
 0xd5a   :  { %v2701_v28 = vpop.eup %2700 }
 0xd5b   :  { %v1479_v46 = vsel %vm377_vm3, %v2701_v28, 0.0  ;;  %v2703_v29 = vpop.eup %2702 }
 0xd5c   :  { %v1476_v30 = vsel %vm377_vm3, %v2703_v29, 0.0 }
 0xd5d   :  { %1510 = vrot.lane.b32.xlu1 %v3142_v55, %s2763_s1 }
 0xd6a   :  { %v1436_v22 = vpop.xlane.xlu0 %1435 }
 0xd6b   :  { %v1444_v24 = vsub.f32 %v1412_v0, %v1436_v22 }
 0xd6d   :  { %v1459_v12 = vmul.f32 1.442695, %v1444_v24 }
 0xd6e   :  { %v1701_v58 = vpop.permute.xlu0 %1700 }
 0xd6f   :  { %2704 = vpow2.f32 %v1459_v12 }
 0xd79   :  { %v2705_v31 = vpop.eup %2704 }
 0xd7a   :  { %v1482_v32 = vsel %vm377_vm3, %v2705_v31, 0.0 }
 0xd81   :  { %1465 = vadd.xlane.f32.xlu1 %v1464_v25 }
 0xd85   :  { %1474 = vadd.xlane.f32.xlu1 %v1473_v27 }
 0xd89   :  { %1480 = vadd.xlane.f32.xlu1 %v1479_v46 }
 0xd8d   :  { %1477 = vadd.xlane.f32.xlu1 %v1476_v30 }
 0xd91   :  { %1483 = vadd.xlane.f32.xlu1 %v1482_v32 }
 0xda2   :  { %1797 = vrot.lane.b32.xlu1 %v3142_v55, %s2765_s11 }
 0xda6   :  { %1897 = vrot.lane.b32.xlu1 %v3131_v44, %s2767_s19 }
 0xdd9   :  { %v1463_v33 = vpop.xlane.xlu1 %1462 }
 0xdda   :  { %2706 = vrcp.f32 %v1463_v33 }
 0xddd   :  { %v1511_v34 = vpop.permute.xlu1 %1510 }
 0xdde   :  { %2531 = vmatpush3.bf16.msra.mxu1 %v1511_v34 }
 0xddf   :  { %2542 = vmatprep.subr.bf16.mxu1 %v2755_v10 }
 0xde4   :  { %v2707_v39 = vpop.eup %2706 }
 0xde5   :  { %v1493_v55 = vmul.f32 %v2707_v39, %v2695_v6 }
 0xe0e   :  { %v1466_v35 = vpop.xlane.xlu1 %1465 }
 0xe0f   :  { %2708 = vrcp.f32 %v1466_v35 }
 0xe12   :  { %v1475_v36 = vpop.xlane.xlu1 %1474 }
 0xe16   :  { %v1481_v37 = vpop.xlane.xlu1 %1480 }
 0xe19   :  { %v2709_v40 = vpop.eup %2708 }
 0xe1a   :  { %v1494_v45 = vmul.f32 %v2709_v40, %v2697_v38  ;;  %v1478_v47 = vpop.xlane.xlu1 %1477  ;;  %v1598_v44 = vpop.f32.mrb[40].mxu0  ;;  %v2292_v38 = vld [vmem:[%s3368_s3 + $0x1c] sm:$0xf] }
 0xe1b   :  { %2710 = vrcp.f32 %v1478_v47  ;;  %v2540_v48 = vpop.f32.mrb[41].mxu0 }
 0xe1c   :  { %v1601_v51 = vpop.f32.mrb[42].mxu0  ;;  %v1501_v54 = vpack.c.bf16 %v1494_v45, %v1493_v55  ;;  %2712 = vrcp.f32 %v1475_v36 }
 0xe1d   :  { %v1605_v0 = vpack.c.bf16 %v1601_v51, %v1598_v44  ;;  %v2541_v1 = vpop.f32.mrb[43].mxu0 }
 0xe1e   :  { %2533 = vmatmul.mubr.msk.bf16.vlgmr.msra.gmra.mrb[40].mxu1 %vm377_vm3, %v1501_v54  ;;  %v1484_v57 = vpop.xlane.xlu1 %1483 }
 0xe1f   :  { %2543 = vmatpush3.bf16.msra.mxu1 %v1610_v56  ;;  %2544 = vmatprep.mubr.msk.bf16.mxu1 %vm2756_vm1, %v2755_v10  ;;  %2714 = vrcp.f32 %v1484_v57 }
 0xe20   :  { %2554 = vmatprep.subr.bf16.mxu1 %v2755_v10  ;;  %2716 = vrcp.f32 %v1481_v37 }
 0xe22   :  { %v1798_v2 = vpop.permute.xlu1 %1797 }
 0xe25   :  { %v2711_v60 = vpop.eup %2710 }
 0xe26   :  { %2545 = vmatmul.mubr.msk.bf16.vlgmr.msra.gmra.mrb[44].mxu1 %vm167_vm2, %v1605_v0  ;;  %v2713_v59 = vpop.eup %2712  ;;  %v1498_v61 = vmul.f32 %v2711_v60, %v2703_v29  ;;  %v1898_v0 = vpop.permute.xlu1 %1897 }
 0xe27   :  { %2555 = vmatpush3.bf16.msra.mxu1 %v1701_v58  ;;  %2556 = vmatprep.mubr.msk.bf16.mxu1 %vm2756_vm1, %v2755_v10  ;;  %v1497_v8 = vmul.f32 %v2713_v59, %v2699_v26 }
 0xe28   :  { %2566 = vmatprep.subr.bf16.mxu1 %v2755_v10 }
 0xe29   :  { %v1503_v63 = vpack.c.bf16 %v1498_v61, %v1497_v8  ;;  %v2715_v62 = vpop.eup %2714 }
 0xe2a   :  { %v2717_v3 = vpop.eup %2716  ;;  %v1500_v5 = vmul.f32 %v2715_v62, %v2705_v31 }
 0xe2b   :  { %v1499_v6 = vmul.f32 %v2717_v3, %v2701_v28  ;;  %v1849_v28 = vsel %vm573_vm4, %v2292_v38, 0  ;;  %v2626_v3 = vld [vmem:[%s3369_s4 + $0x10] sm:$0xff]  }
 0xe2d   :  { %v1504_v9 = vpack.c.bf16 %v1500_v5, %v1499_v6  ;;  %v2627_v5 = vld [vmem:[%s3369_s4 + $0x18] sm:$0xff]   ;;  %v2305_v6 = vld [vmem:[%s3372_s7 + $0x4] ss:$0 sm:$0xff] }
 0xe2e   :  { %2557 = vmatmul.mubr.msk.bf16.vlgmr.msra.gmra.mrb[48].mxu1 %vm377_vm3, %v1503_v63 }
 0xe2f   :  { %2567 = vmatpush3.bf16.msra.mxu1 %v1798_v2  ;;  %2568 = vmatprep.mubr.msk.bf16.mxu1 %vm2756_vm1, %v2755_v10 }
 0xe30   :  { %2578 = vmatprep.subr.bf16.mxu1 %v2755_v10 }
 0xe36   :  { %2569 = vmatmul.mubr.msk.bf16.vlgmr.msra.gmra.mrb[52].mxu1 %vm377_vm3, %v1504_v9 }
 0xe37   :  { %2582 = vmatprep.mubr.msk.bf16.mxu1 %vm2756_vm1, %v2755_v10  ;;  %2579 = vmatpush3.bf16.msra.mxu1 %v2626_v3 }
 0xe38   :  { %2580 = vmatprep.subr.bf16.mxu1 %v2755_v10 }
 0xe3b   :  { %2581 = vmatpush3.bf16.msra.mxu1 %v2627_v5 }
 0xef1   :  { %v1550_v52 = vpop.f32.mrb[40].mxu1 }
 0xef2   :  { %v2534_v53 = vpop.f32.mrb[41].mxu1 }
 0xef3   :  { %v1553_v16 = vpop.f32.mrb[42].mxu1 }
 0xef4   :  { %v1557_v17 = vpack.c.bf16 %v1553_v16, %v1550_v52  ;;  %v2535_v18 = vpop.f32.mrb[43].mxu1 }
 0xef6   :  { %2551 = vmatmul.mubr.msk.bf16.vlgmr.msra.gmra.mrb[44].mxu0 %vm167_vm2, %v1557_v17 }
 0xef7   :  { %2561 = vmatpush3.bf16.msra.mxu0 %v1752_v19  ;;  %2562 = vmatprep.mubr.msk.bf16.mxu0 %vm2756_vm1, %v2755_v10 }
 0xef8   :  { %2572 = vmatprep.subr.bf16.mxu0 %v2755_v10 }
 0xef9   :  { %v1646_v20 = vpop.f32.mrb[44].mxu1 }
 0xefa   :  { %v2546_v21 = vpop.f32.mrb[45].mxu1 }
 0xefb   :  { %v1649_v22 = vpop.f32.mrb[46].mxu1 }
 0xefc   :  { %v2547_v23 = vpop.f32.mrb[47].mxu1 }
 0xf01   :  { %v1740_v24 = vpop.f32.mrb[48].mxu1 }
 0xf02   :  { %v2558_v12 = vpop.f32.mrb[49].mxu1 }
 0xf03   :  { %v1743_v25 = vpop.f32.mrb[50].mxu1 }
 0xf04   :  { %v1747_v26 = vpack.c.bf16 %v1743_v25, %v1740_v24  ;;  %v2559_v27 = vpop.f32.mrb[51].mxu1 }
 0xf06   :  { %2563 = vmatmul.mubr.msk.bf16.vlgmr.msra.gmra.mrb[48].mxu0 %vm167_vm2, %v1747_v26 }
 0xf07   :  { %2573 = vmatpush3.bf16.msra.mxu0 %v1849_v28  ;;  %2574 = vmatprep.mubr.msk.bf16.mxu0 %vm2756_vm1, %v2755_v10 }
 0xf08   :  { %2586 = vmatprep.subr.bf16.mxu0 %v2755_v10 }
 0xf09   :  { %v1837_v46 = vpop.f32.mrb[52].mxu1 }
 0xf0a   :  { %v2570_v29 = vpop.f32.mrb[53].mxu1 }
 0xf0b   :  { %v1840_v30 = vpop.f32.mrb[54].mxu1 }
 0xf0c   :  { %v1844_v31 = vpack.c.bf16 %v1840_v30, %v1837_v46  ;;  %v2571_v32 = vpop.f32.mrb[55].mxu1 }
 0xf0e   :  { %2575 = vmatmul.mubr.msk.bf16.vlgmr.msra.gmra.mrb[52].mxu0 %vm167_vm2, %v1844_v31 }
 0xf0f   :  { %2594 = vmatprep.mubr.msk.bf16.mxu0 %vm2756_vm1, %v2755_v10 }
 0xfc9   :  { %v1693_v33 = vpop.f32.mrb[44].mxu0 }
 0xfca   :  { %v1694_v34 = vadd.f32 %v1693_v33, %v1646_v20  ;;  %v2552_v35 = vpop.f32.mrb[45].mxu0  ;;  %v2628_v33 = vld [vmem:[%s3370_s5 + $0x20] sm:$0xff]  }
 0xfcb   :  { %v1696_v36 = vpop.f32.mrb[46].mxu0  ;;  %2587 = vmatpush3.bf16.msra.mxu0 %v2628_v33  ;;  %v2630_v35 = vld [vmem:[%s3370_s5 + $0x30] sm:$0xff]  }
 0xfcc   :  { %v1697_v37 = vadd.f32 %v1696_v36, %v1649_v22  ;;  %v2553_v39 = vpop.f32.mrb[47].mxu0  ;;  %2588 = vmatprep.subr.bf16.mxu0 %v2755_v10  ;;  %v2631_v36 = vld [vmem:[%s3370_s5 + $0x38] sm:$0xff]  }
 0xfd9   :  { %v1788_v40 = vpop.f32.mrb[48].mxu0 }
 0xfda   :  { %v1795_v41 = vadd.f32 %v1788_v40, %v1694_v34  ;;  %v2564_v55 = vpop.f32.mrb[49].mxu0  ;;  %v2629_v34 = vld [vmem:[%s3370_s5 + $0x28] sm:$0xff]  }
 0xfdb   :  { %v1791_v45 = vpop.f32.mrb[50].mxu0  ;;  %2589 = vmatpush3.bf16.msra.mxu0 %v2629_v34 }
 0xfdc   :  { %v1796_v47 = vadd.f32 %v1791_v45, %v1697_v37  ;;  %v2565_v44 = vpop.f32.mrb[51].mxu0  ;;  %2590 = vmatprep.subr.bf16.mxu0 %v2755_v10 }
 0xfdf   :  { %2591 = vmatpush3.bf16.msra.mxu0 %v2630_v35 }
 0xfe0   :  { %2592 = vmatprep.subr.bf16.mxu0 %v2755_v10 }
 0xfe1   :  { %v1885_v48 = vpop.f32.mrb[52].mxu0 }
 0xfe2   :  { %v1892_v51 = vadd.f32 %v1885_v48, %v1795_v41  ;;  %v2576_v54 = vpop.f32.mrb[53].mxu0 }
 0xfe3   :  { %v1888_v56 = vpop.f32.mrb[54].mxu0  ;;  %2593 = vmatpush3.bf16.msra.mxu0 %v2631_v36 }
 0xfe4   :  { %v1894_v1 = vadd.f32 %v1892_v51, %v3091_v4  ;;  %v1893_v57 = vadd.f32 %v1888_v56, %v1796_v47  ;;  %v2577_v60 = vpop.f32.mrb[55].mxu0 }
 0xfe6   :  { %v1895_v58 = vadd.f32 %v1893_v57, %v3094_v7  ;;  %v3260_v59 = vadd.f32 %v1898_v0, %v1894_v1 }
 0xfe8   :  { %v3262_v61 = vadd.f32 %v1898_v0, %v1895_v58  ;;  %v1902_v8 = vsel %vm40_vm0, %v3260_v59, 0.0  ;;  %v1910_v4 = vmul.f32 %v3260_v59, %v3260_v59 }
 0xfe9   :  { %1903 = vadd.xlane.f32.xlu1 %v1902_v8 }
 0xfea   :  { %v1905_v63 = vsel %vm40_vm0, %v3262_v61, 0.0  ;;  %v1911_v62 = vmul.f32 %v3262_v61, %v3262_v61  ;;  %v1912_v2 = vsel %vm40_vm0, %v1910_v4, 0.0 }
 0xfeb   :  { %1906 = vadd.xlane.f32.xlu0 %v1905_v63 }
 0xfec   :  { %v1915_v7 = vsel %vm40_vm0, %v1911_v62, 0.0 }
 0xfed   :  { %1916 = vadd.xlane.f32.xlu1 %v1915_v7 }
 0xfef   :  { %1913 = vadd.xlane.f32.xlu0 %v1912_v2 }
 0xffe   :  { %1937 = vrot.lane.b32.xlu1 %v3109_v15, %s2767_s19 }
0x1002   :  { %2107 = vrot.lane.b32.xlu1 %v2305_v6, %s2763_s1 }
0x1005   :  { %1932 = vrot.lane.b32.xlu0 %v3109_v15, %s2763_s1 }
0x1076   :  { %v1904_v9 = vpop.xlane.xlu1 %1903 }
0x1077   :  { %v1908_v11 = vmul.f32 0.03125, %v1904_v9 }
0x1078   :  { %v1907_v15 = vpop.xlane.xlu0 %1906 }
0x1079   :  { %v1909_v13 = vmul.f32 0.03125, %v1907_v15  ;;  %v1920_v17 = vmul.f32 %v1908_v11, %v1908_v11  ;;  %v1924_v12 = vsub.f32 %v3260_v59, %v1908_v11 }
0x107a   :  { %v1917_v52 = vpop.xlane.xlu1 %1916 }
0x107b   :  { %v1921_v14 = vmul.f32 %v1909_v13, %v1909_v13  ;;  %v1919_v53 = vmul.f32 0.03125, %v1917_v52  ;;  %v1925_v23 = vsub.f32 %v3262_v61, %v1909_v13 }
0x107c   :  { %v1914_v16 = vpop.xlane.xlu0 %1913 }
0x107d   :  { %v1923_v18 = vsub.f32 %v1919_v53, %v1921_v14  ;;  %v1918_v19 = vmul.f32 0.03125, %v1914_v16 }
0x107e   :  { %v1938_v46 = vpop.permute.xlu1 %1937 }
0x107f   :  { %v1927_v20 = vadd.f32 1e-05, %v1923_v18  ;;  %v1922_v21 = vsub.f32 %v1918_v19, %v1920_v17 }
0x1080   :  { %v1933_v38 = vpop.permute.xlu0 %1932 }
0x1081   :  { %2718 = vrsqrt.f32 %v1927_v20  ;;  %v1926_v22 = vadd.f32 1e-05, %v1922_v21  ;;  %v2634_v21 = vld [vmem:[%s3371_s6 + $0x4] ss:$8 sps:$4 sm:$0xff]  }
0x1082   :  { %2183 = vmatprep.subr.bf16.mxu1 %v2634_v21 }
0x1083   :  { %2720 = vrsqrt.f32 %v1926_v22  ;;  %v2632_v22 = vld [vmem:[%s3371_s6] ss:$8 sps:$4 sm:$0xff]  }
0x108b   :  { %v2719_v24 = vpop.eup %2718 }
0x108c   :  { %v1931_v25 = vmul.f32 %v2719_v24, %v1925_v23 }
0x108d   :  { %v2721_v26 = vpop.eup %2720 }
0x108e   :  { %v1930_v27 = vmul.f32 %v2721_v26, %v1924_v12  ;;  %v1936_v28 = vmul.f32 %v1933_v38, %v1931_v25 }
0x1090   :  { %v1935_v29 = vmul.f32 %v1933_v38, %v1930_v27  ;;  %v1941_v31 = vadd.f32 %v1938_v46, %v1936_v28 }
0x1092   :  { %v1940_v30 = vadd.f32 %v1938_v46, %v1935_v29 }
0x1094   :  { %v1942_v32 = vpack.c.bf16 %v1941_v31, %v1940_v30 }
0x1096   :  { %2583 = vmatmul.mubr.msk.bf16.vlgmr.msra.gmra.mrb[56].mxu1 %vm40_vm0, %v1942_v32 }
0x1097   :  { %2184 = vmatpush1.bf16.msra.mxu1 %v2632_v22 }
0x1169   :  { %v2001_v37 = vpop.f32.mrb[56].mxu1 }
0x116a   :  { %v2002_v39 = vadd.f32 %v2305_v6, %v2001_v37  ;;  %v2584_v40 = vpop.f32.mrb[57].mxu1 }
0x116b   :  { %v2004_v41 = vpop.f32.mrb[58].mxu1 }
0x116c   :  { %v2008_v55 = vmul.f32 %v2002_v39, %v2002_v39  ;;  %v2005_v45 = vadd.f32 %v2305_v6, %v2004_v41  ;;  %v2585_v47 = vpop.f32.mrb[59].mxu1  ;;  %v2108_v6 = vpop.permute.xlu1 %2107 }
0x116e   :  { %v2010_v44 = vmul.f32 %v2008_v55, %v2002_v39  ;;  %v2009_v48 = vmul.f32 %v2005_v45, %v2005_v45 }
0x1170   :  { %v2012_v51 = vmul.f32 0.044715, %v2010_v44  ;;  %v2011_v54 = vmul.f32 %v2009_v48, %v2005_v45 }
0x1172   :  { %v2014_v56 = vadd.f32 %v2012_v51, %v2002_v39  ;;  %v2013_v0 = vmul.f32 0.044715, %v2011_v54 }
0x1174   :  { %v2016_v1 = vmul.f32 0.7978846, %v2014_v56  ;;  %v2015_v10 = vadd.f32 %v2013_v0, %v2005_v45 }
0x1176   :  { %2722 = vtanh.f32 %v2016_v1  ;;  %v2017_v57 = vmul.f32 0.7978846, %v2015_v10 }
0x1178   :  { %2724 = vtanh.f32 %v2017_v57 }
0x1180   :  { %v2723_v60 = vpop.eup %2722 }
0x1181   :  { %v2020_v58 = vadd.f32 1.0, %v2723_v60 }
0x1182   :  { %v2725_v8 = vpop.eup %2724 }
0x1183   :  { %v2022_v63 = vmul.f32 0.5, %v2020_v58  ;;  %v2021_v62 = vadd.f32 1.0, %v2725_v8 }
0x1185   :  { %v2023_v4 = vmul.f32 0.5, %v2021_v62  ;;  %v2024_v7 = vmul.f32 %v2022_v63, %v2002_v39 }
0x1187   :  { %v2025_v2 = vmul.f32 %v2023_v4, %v2005_v45 }
0x1189   :  { %v2026_v3 = vpack.c.bf16 %v2025_v2, %v2024_v7 }
0x118b   :  { %2595 = vmatmul.mubr.msk.bf16.vlgmr.msra.gmra.mrb[56].mxu0 %vm157_vm5, %v2026_v3 }
0x125e   :  { %v2097_v5 = vpop.f32.mrb[56].mxu0 }
0x125f   :  { %v2104_v9 = vadd.f32 %v2097_v5, %v3260_v59  ;;  %v2596_v15 = vpop.f32.mrb[57].mxu0 }
0x1260   :  { %v2100_v11 = vpop.f32.mrb[58].mxu0 }
0x1261   :  { %v2110_v13 = vadd.f32 %v2108_v6, %v2104_v9  ;;  %v2105_v52 = vadd.f32 %v2100_v11, %v3262_v61  ;;  %v2597_v14 = vpop.f32.mrb[59].mxu0  ;;  %v2322_v61 = vld [vmem:[%s3372_s7 + $0x6] ss:$0 sm:$0xff] }
0x1263   :  { %v2111_v53 = vadd.f32 %v2108_v6, %v2105_v52  ;;  %v2113_v16 = vsel %vm40_vm0, %v2110_v13, 0.0  ;;  %v2121_v17 = vmul.f32 %v2110_v13, %v2110_v13 }
0x1264   :  { %2114 = vadd.xlane.f32.xlu0 %v2113_v16 }
0x1265   :  { %v2116_v18 = vsel %vm40_vm0, %v2111_v53, 0.0  ;;  %v2123_v19 = vsel %vm40_vm0, %v2121_v17, 0.0  ;;  %v2122_v20 = vmul.f32 %v2111_v53, %v2111_v53 }
0x1266   :  { %2117 = vadd.xlane.f32.xlu1 %v2116_v18 }
0x1267   :  { %v2126_v59 = vsel %vm40_vm0, %v2122_v20, 0.0 }
0x1268   :  { %2124 = vadd.xlane.f32.xlu0 %v2123_v19 }
0x126c   :  { %2127 = vadd.xlane.f32.xlu0 %v2126_v59 }
0x1277   :  { %2150 = vrot.lane.b32.xlu1 %v2322_v61, %s2754_s14 }
0x127b   :  { %153 = vrot.lane.b32.xlu1 %v2879_v43, %s2754_s14  ;;  %v2637_v43 = vld [vmem:[%s3371_s6 + $0x14] ss:$8 sps:$4 sm:$0xff]  }
0x127c   :  { %2185 = vmatprep.subr.bf16.mxu1 %v2637_v43 }
0x127f   :  { %1188 = vrot.lane.b32.xlu1 %v3134_v49, %s2767_s19  ;;  %v2768_v49 = vmov 0  }
0x1280   :  { %2215 = vmatprep.mubr.bf16.mxu1 %v2768_v49 }
0x1282   :  { %151 = vrot.lane.b32.xlu0 %v2876_v42, %s2754_s14  ;;  %v2635_v42 = vld [vmem:[%s3371_s6 + $0x10] ss:$8 sps:$4 sm:$0xff]  }
0x1283   :  { %2186 = vmatpush1.bf16.msra.mxu1 %v2635_v42 }
0x1286   :  { %1190 = vrot.lane.b32.xlu0 %v3137_v50, %s2767_s19 }
0x12f1   :  { %v2115_v50 = vpop.xlane.xlu0 %2114 }
0x12f2   :  { %v2119_v23 = vmul.f32 0.03125, %v2115_v50 }
0x12f3   :  { %v2118_v24 = vpop.xlane.xlu1 %2117 }
0x12f4   :  { %v2131_v12 = vmul.f32 %v2119_v23, %v2119_v23  ;;  %v2120_v25 = vmul.f32 0.03125, %v2118_v24  ;;  %v2135_v39 = vsub.f32 %v2110_v13, %v2119_v23 }
0x12f5   :  { %v2125_v38 = vpop.xlane.xlu0 %2124 }
0x12f6   :  { %v2129_v26 = vmul.f32 0.03125, %v2125_v38  ;;  %v2132_v29 = vmul.f32 %v2120_v25, %v2120_v25  ;;  %v2136_v55 = vsub.f32 %v2111_v53, %v2120_v25 }
0x12f7   :  { %v2151_v27 = vpop.permute.xlu1 %2150 }
0x12f8   :  { %v2133_v28 = vsub.f32 %v2129_v26, %v2131_v12 }
0x12f9   :  { %v2128_v46 = vpop.xlane.xlu0 %2127 }
0x12fa   :  { %v2137_v30 = vadd.f32 1e-05, %v2133_v28  ;;  %v2130_v31 = vmul.f32 0.03125, %v2128_v46 }
0x12fb   :  { %v154_v32 = vpop.permute.xlu1 %153 }
0x12fc   :  { %2726 = vrsqrt.f32 %v2137_v30  ;;  %v2134_v33 = vsub.f32 %v2130_v31, %v2132_v29  ;;  %159 = vst.msk [vmem:[%s3374_s9 + $0x8] sm:$0xff] %vm157_vm5, %v154_v32 }
0x12fd   :  { %v152_v34 = vpop.permute.xlu0 %151 }
0x12fe   :  { %v2138_v35 = vadd.f32 1e-05, %v2134_v33  ;;  %158 = vst.msk [vmem:[%s3374_s9] sm:$0xff] %vm157_vm5, %v152_v34 }
0x12ff   :  { %v1189_v36 = vpop.permute.xlu1 %1188 }
0x1300   :  { %2728 = vrsqrt.f32 %v2138_v35  ;;  %1195 = vst.msk [vmem:[%s3374_s9] sm:$0xff] %vm1194_vm6, %v1189_v36 }
0x1301   :  { %v1191_v37 = vpop.permute.xlu0 %1190 }
0x1302   :  { %1196 = vst.msk [vmem:[%s3374_s9 + $0x8] sm:$0xff] %vm1194_vm6, %v1191_v37  ;;  %s2730_s9 = scalar_lea.vmem %s2236_s29, 512 }
0x1303   :  { %p2731_p0 = scmp.ne.s32.totalorder %s2236_s29, %s2730_s9  ;;  %p2736_p2 = scmp.lt.s32.totalorder %s2730_s9, %s2730_s9 }
0x1305   :  { %p2737_p3 = por %p2736_p2, %p2735_p1 }
0x1306   :  { %v2727_v40 = vpop.eup %2726 }
0x1307   :  { %v2141_v41 = vmul.f32 %v2727_v40, %v2135_v39  ;;  %p2738_p4 = pnand %p2737_p3, %p2731_p0 }
0x1309   :  { %v2147_v47 = vmul.f32 %v2322_v61, %v2141_v41 }
0x130a   :  { %v2729_v45 = vpop.eup %2728 }
0x130b   :  { %v2142_v44 = vmul.f32 %v2729_v45, %v2136_v55  ;;  %v2153_v51 = vadd.f32 %v2151_v27, %v2147_v47 }
0x130d   :  { %v2148_v48 = vmul.f32 %v2322_v61, %v2142_v44 }
0x130f   :  { %v2154_v54 = vadd.f32 %v2151_v27, %v2148_v48 }
0x1311   :  { %v2155_v56 = vpack.c.bf16 %v2154_v54, %v2153_v51 }
0x1313   :  { %2327 = vmatmul.mubr.msk.bf16.vlgmr.msra.gmra.mrb[60].mxu1 %vm40_vm0, %v2155_v56 }
0x13e6   :  { %v2217_v0 = vpop.f32.mrb[60].mxu1 }
0x13e7   :  { %2226 = vst [vmem:[#allocation2] sm:$0xff] %v2217_v0  ;;  %v2219_v1 = vpop.f32.mrb[61].mxu1 }
0x13e8   :  { %2227 = vst [vmem:[#allocation2 + $0x8] sm:$0xff] %v2219_v1  ;;  %v2221_v10 = vpop.f32.mrb[62].mxu1 }
0x13e9   :  { %2228 = vst [vmem:[#allocation2 + $0x10] sm:$0xff] %v2221_v10  ;;  %v2223_v57 = vpop.f32.mrb[63].mxu1 }
0x13ea   :  { %2229 = vst [vmem:[#allocation2 + $0x18] sm:$0xff] %v2223_v57 }
0x13eb   :  { %2741 = shalt.err (!%p2738_p4)
}
0x13ec   :  { %s2742_s1 = scalar_lea.hbm %s3373_s8, 512 }
0x13ed   :  { %p2743_p5 = scmp.ne.s32.totalorder %s3373_s8, %s2742_s1  ;;  %p2746_p6 = scmp.lt.u32.totalorder %s2742_s1, %s3373_s8 }
0x13ef   :  { %p2748_p7 = pnand %p2746_p6, %p2743_p5 }
0x13f1   :  { %2751 = shalt.err (!%p2748_p7)
}
0x13f2   :  { %s2770_s17 = smov 256   ;;  %s2771_s18 = smov 16  }
0x13f3   :  { %2241 = dma.vmem_to_hbm [thread:$0]  %s2236_s29, 512, %s3373_s8, [#allocation3], %s2770_s17, %s2770_s17, %s2771_s18  }
0x13f4   :  { %2752 = dma.done.wait [#allocation3], 512  }
0x13f5   :  { %2753 = vsyncadd [#allocation3], 4294966784 }
0x13f6   :  { %2249 = vsyncpa [#allocation3], 1 }

</bundles_post_ra>
